<compile_context>
chip_gen: v7x
topology: tpu7x:2x2x1
jax: 0.10.0
libtpu: 0.0.40
codegen_flags: <defaults>
</compile_context>

<pallas_src>
import jax
import jax.numpy as jnp
from jax.experimental import pallas as pl
from jax.experimental.pallas import tpu as pltpu

# ---- model hyper-parameters (forced by the fc Linear(8*10*10, 64)) ----
IMG = 86
HISTORY = 2
NUM_ACTIONS = 5

C1, K1 = 16, 4            # conv1: out channels, kernel (stride 2)
C2, K2 = 8, 2             # conv2: out channels, kernel (stride 1)
FC_IN = C2 * 10 * 10      # 800
FC_HID = 64

PATCH_K = HISTORY * K1 * K1      # 32   (contraction dim of conv1 matmul)
FRAME = 128                      # padded per-phase 11x11 frame (121 -> 128)
OUT_PAD = 128                    # lane-dense padded output width
MAX_BB = 8                       # batch elements folded into lanes per step


# ---------------------------------------------------------------------------
# Fused kernel: conv1+ReLU+pool1 -> conv2+ReLU+pool2 -> fc1+ReLU -> fc2
# ---------------------------------------------------------------------------
def fused_cnn_kernel(p_ref, w1_ref, b1_ref, w2_ref, b2_ref,
                     wfc1_ref, bfc1_ref, wfc2_ref, bfc2_ref,
                     out_ref, fscr_ref):
    # p_ref    : (1, 4, 32, 4*BB*128) bf16 im2col patches; lane index
    #            = pp*(BB*128) + b*128 + sa*11+sb, pool-1 member dd on axis 1
    # w1_ref   : (16, 32) f32   conv1 weights / 255
    # b1_ref   : (16, 1)
    # w2_ref   : (4, 8, 16)     conv2 per-tap weights, tap = ki*2+kj
    # b2_ref   : (8, 1)
    # wfc1_ref : (1024, 64)     fc1 weights, rows c*128 + ui*11 + uj (rest 0)
    # bfc1_ref : (1, 64)
    # wfc2_ref : (64, 128)      fc2 weights zero-padded to 128 lanes
    # bfc2_ref : (1, 128)
    # out_ref  : (BB, 128)
    # fscr_ref : (BB, 8, 128)   VMEM scratch: lane->sublane batch move for FC
    BB = out_ref.shape[0]
    BBL = BB * FRAME
    assert p_ref.shape == (1, 4, PATCH_K, 4 * BBL)

    w1 = w1_ref[...]
    b1 = b1_ref[...]
    b2 = b2_ref[...]

    # ---- conv1 (+bias+ReLU) + 2x2 maxpool: 4 batched matmuls ---------------
    mx = None
    for dd in range(4):                                   # pool-1 members
        blk = p_ref[0, dd].astype(jnp.float32)            # (32, 4*BBL) exact cast
        h = jnp.dot(w1, blk, preferred_element_type=jnp.float32)
        mx = h if mx is None else jnp.maximum(mx, h)
    # relu(max(h)+b) == max(relu(h+b)): bias constant over pool members
    act1 = jnp.maximum(mx + b1, 0.0)                      # (16, 4*BBL)

    # ---- conv2 taps: 9 shifted phase blocks (5 lane-unaligned, once/step) ---
    def tap(oi, oj):
        pp = (oi % 2) * 2 + (oj % 2)
        d = (oi // 2) * 11 + (oj // 2)
        s = pp * BBL + d
        return act1[:, s:s + BBL]                         # (16, BBL)

    taps = {(oi, oj): tap(oi, oj) for oi in range(3) for oj in range(3)}

    # ---- conv2 (+bias+ReLU) + 2x2 maxpool: per-tap accumulation ------------
    mx2 = None
    for ei in range(2):
        for ej in range(2):                               # pool-2 members
            acc = None
            for ki in range(2):
                for kj in range(2):                       # conv2 taps
                    w2t = w2_ref[ki * 2 + kj]             # (8, 16)
                    c = jnp.dot(w2t, taps[(ei + ki, ej + kj)],
                                preferred_element_type=jnp.float32)
                    acc = c if acc is None else acc + c
            mx2 = acc if mx2 is None else jnp.maximum(mx2, acc)
    feat = jnp.maximum(mx2 + b2, 0.0)                     # (8, BBL)

    # ---- FC stage: batch moves from lanes to sublanes via VMEM scratch -----
    for b in range(BB):                                   # tiny 4 KB copies
        fscr_ref[b] = feat[:, b * FRAME:(b + 1) * FRAME]  # (8, 128)
    fc_lhs = jnp.concatenate([fscr_ref[:, c, :] for c in range(C2)],
                             axis=1)                      # (BB, 1024)
    h1 = jnp.maximum(
        jnp.dot(fc_lhs, wfc1_ref[...], preferred_element_type=jnp.float32)
        + bfc1_ref[...], 0.0)                             # (BB, 64)
    out_ref[...] = (jnp.dot(h1, wfc2_ref[...],
                            preferred_element_type=jnp.float32)
                    + bfc2_ref[...])                      # (BB, 128)


# ---------------------------------------------------------------------------
# Wrapper glue
# ---------------------------------------------------------------------------
def _pick_block(batch):
    if batch <= MAX_BB:
        return batch            # single grid step; block == full batch
    return MAX_BB               # >8 elements -> >=2 "parallel" grid steps


def build_conv1_patches(x, bb):
    """im2col for conv1, emitted directly in the kernel's padded bf16 layout.

    P[g, di*2+dj, ci*16+ki*4+kj, (pa*2+pb)*(bb*128) + b*128 + sa*11+sb]
        = x[g*bb+b, ci, 8*sa + 4*pa + 2*di + ki, 8*sb + 4*pb + 2*dj + kj]
    Lanes 121..127 of each frame and the (sa,pa)=(10,1) rows are zero padding;
    they never reach a valid output (matching fc1 rows are zero).
    """
    batch = x.shape[0]
    grid = -(-batch // bb)
    bp = grid * bb
    xb = x.astype(jnp.bfloat16)        # pixel values 0..255 are exact in bf16
    if bp != batch:
        xb = jnp.pad(xb, ((0, bp - batch), (0, 0), (0, 0), (0, 0)))
    # 16 stride-2 tap slices (one per (ki,kj)): each (bp, H, 42, 42)
    taps = [xb[:, :, ki:ki + 83:2, kj:kj + 83:2]
            for ki in range(K1) for kj in range(K1)]
    t = jnp.stack(taps, axis=2)                            # (bp, H, 16, 42, 42)
    # pad conv1's 42x42 output grid to 44x44 = (11*2*2)^2 and split each
    # spatial axis into (frame sa, phase pa, pool member di)
    t = jnp.pad(t, ((0, 0), (0, 0), (0, 0), (0, 2), (0, 2)))
    t = t.reshape(grid, bb, HISTORY, K1 * K1, 11, 2, 2, 11, 2, 2)
    #             g     b   ci       kk      sa  pa di  sb pb  dj
    t = jnp.transpose(t, (0, 6, 9, 2, 3, 5, 8, 1, 4, 7))
    # (g, di, dj, ci, kk, pa, pb, b, sa, sb)
    t = t.reshape(grid, 4, PATCH_K, 4, bb, 121)
    t = jnp.pad(t, ((0, 0), (0, 0), (0, 0), (0, 0), (0, 0), (0, FRAME - 121)))
    return t.reshape(grid, 4, PATCH_K, 4 * bb * FRAME)


def prepare_params(params):
    """One-time weight re-layouts (hoisted out of the per-call hot path)."""
    w1 = params['conv1_w'].astype(jnp.float32)                 # (16, H, 4, 4)
    w1m = w1.reshape(C1, PATCH_K) / 255.0                      # fold x/255 in
    b1 = params['conv1_b'].astype(jnp.float32)[:, None]        # (16, 1)

    w2 = params['conv2_w'].astype(jnp.float32)                 # (8, 16, 2, 2)
    w2t = jnp.transpose(w2, (2, 3, 0, 1)).reshape(K2 * K2, C2, C1)  # (4, 8, 16)
    b2 = params['conv2_b'].astype(jnp.float32)[:, None]        # (8, 1)

    # fc1 re-indexed to the kernel's padded per-channel 128-lane frame
    w_src = params['fc1_w'].astype(jnp.float32).T.reshape(C2, 10, 10, FC_HID)
    cc, uu, vv = jnp.meshgrid(jnp.arange(C2), jnp.arange(10), jnp.arange(10),
                              indexing='ij')
    wfc1 = jnp.zeros((C2, FRAME, FC_HID), jnp.float32)
    wfc1 = wfc1.at[cc, uu * 11 + vv].set(w_src).reshape(C2 * FRAME, FC_HID)
    bfc1 = params['fc1_b'].astype(jnp.float32)[None, :]        # (1, 64)

    wfc2 = jnp.zeros((FC_HID, OUT_PAD), jnp.float32).at[:, :NUM_ACTIONS].set(
        params['fc2_w'].T.astype(jnp.float32))
    bfc2 = jnp.zeros((1, OUT_PAD), jnp.float32).at[0, :NUM_ACTIONS].set(
        params['fc2_b'].astype(jnp.float32))
    return dict(w1m=w1m, b1=b1, w2t=w2t, b2=b2,
                wfc1=wfc1, bfc1=bfc1, wfc2=wfc2, bfc2=bfc2)


def forward(prep, x):
    assert x.shape[1] == HISTORY and x.shape[2] == IMG and x.shape[3] == IMG
    batch = x.shape[0]
    bb = _pick_block(batch)
    patches = build_conv1_patches(x, bb)           # (G, 4, 32, 4*bb*128) bf16
    grid = patches.shape[0]
    nl = patches.shape[3]
    bp = grid * bb

    macs = bp * (4 * C1 * PATCH_K * (4 * FRAME)            # conv1
                 + 16 * C2 * C1 * FRAME                    # conv2
                 + C2 * FRAME * FC_HID                     # fc1
                 + FC_HID * OUT_PAD)                       # fc2
    bytes_accessed = (patches.size * 2 + bp * OUT_PAD * 4
                      + 4 * (C1 * PATCH_K + C1 + K2 * K2 * C2 * C1 + C2
                             + C2 * FRAME * FC_HID + FC_HID
                             + FC_HID * OUT_PAD + OUT_PAD))

    out = pl.pallas_call(
        fused_cnn_kernel,
        out_shape=jax.ShapeDtypeStruct((bp, OUT_PAD), jnp.float32),
        grid=(grid,),
        in_specs=[
            pl.BlockSpec((1, 4, PATCH_K, nl), lambda g: (g, 0, 0, 0)),
            pl.BlockSpec((C1, PATCH_K), lambda g: (0, 0)),
            pl.BlockSpec((C1, 1), lambda g: (0, 0)),
            pl.BlockSpec((K2 * K2, C2, C1), lambda g: (0, 0, 0)),
            pl.BlockSpec((C2, 1), lambda g: (0, 0)),
            pl.BlockSpec((C2 * FRAME, FC_HID), lambda g: (0, 0)),
            pl.BlockSpec((1, FC_HID), lambda g: (0, 0)),
            pl.BlockSpec((FC_HID, OUT_PAD), lambda g: (0, 0)),
            pl.BlockSpec((1, OUT_PAD), lambda g: (0, 0)),
        ],
        out_specs=pl.BlockSpec((bb, OUT_PAD), lambda g: (g, 0)),
        scratch_shapes=[pltpu.VMEM((bb, C2, FRAME), jnp.float32)],
        compiler_params=pltpu.CompilerParams(
            dimension_semantics=("parallel",),
            vmem_limit_bytes=32 * 1024 * 1024),
        cost_estimate=pl.CostEstimate(
            flops=2 * macs, transcendentals=0, bytes_accessed=bytes_accessed),
    )(patches, prep['w1m'], prep['b1'], prep['w2t'], prep['b2'],
      prep['wfc1'], prep['bfc1'], prep['wfc2'], prep['bfc2'])
    return out[:batch, :NUM_ACTIONS]


forward_jit = jax.jit(forward)


# ---------------------------------------------------------------------------
# Deterministic params + pure-JAX reference mirroring the PyTorch forward.
# ---------------------------------------------------------------------------
def init_params(key):
    ks = jax.random.split(key, 8)

    def u(k, shape, fan_in):
        b = 1.0 / (fan_in ** 0.5)
        return jax.random.uniform(k, shape, jnp.float32, -b, b)

    return {
        'conv1_w': u(ks[0], (C1, HISTORY, K1, K1), HISTORY * K1 * K1),
        'conv1_b': u(ks[1], (C1,), HISTORY * K1 * K1),
        'conv2_w': u(ks[2], (C2, C1, K2, K2), C1 * K2 * K2),
        'conv2_b': u(ks[3], (C2,), C1 * K2 * K2),
        'fc1_w':   u(ks[4], (FC_HID, FC_IN), FC_IN),
        'fc1_b':   u(ks[5], (FC_HID,), FC_IN),
        'fc2_w':   u(ks[6], (NUM_ACTIONS, FC_HID), FC_HID),
        'fc2_b':   u(ks[7], (NUM_ACTIONS,), FC_HID),
    }


def ref_forward(params, x):
    B = x.shape[0]
    xf = x.astype(jnp.float32) / 255.0
    dn = ('NCHW', 'OIHW', 'NCHW')
    hp = jax.lax.Precision.HIGHEST
    h = jax.lax.conv_general_dilated(xf, params['conv1_w'], (2, 2), 'VALID',
                                     dimension_numbers=dn, precision=hp)
    h = jnp.maximum(h + params['conv1_b'][None, :, None, None], 0.0)
    h = jax.lax.reduce_window(h, -jnp.inf, jax.lax.max,
                              (1, 1, 2, 2), (1, 1, 2, 2), 'VALID')
    h = jax.lax.conv_general_dilated(h, params['conv2_w'], (1, 1), 'VALID',
                                     dimension_numbers=dn, precision=hp)
    h = jnp.maximum(h + params['conv2_b'][None, :, None, None], 0.0)
    h = jax.lax.reduce_window(h, -jnp.inf, jax.lax.max,
                              (1, 1, 2, 2), (1, 1, 2, 2), 'VALID')
    f = h.reshape(B, FC_IN)
    f = jnp.maximum(jnp.dot(f, params['fc1_w'].T, precision=hp)
                    + params['fc1_b'], 0.0)
    return jnp.dot(f, params['fc2_w'].T, precision=hp) + params['fc2_b']


if __name__ == "__main__":
    key = jax.random.PRNGKey(0)
    pkey, xkey = jax.random.split(key)
    params = init_params(pkey)
    prep = prepare_params(params)

    B = 2
    # integer pixel frames (uint8-like), as the module expects (x.float()/255)
    x = jax.random.randint(xkey, (B, HISTORY, IMG, IMG), 0, 256).astype(jnp.float32)

    out = jax.block_until_ready(forward_jit(prep, x))
    assert out.shape == (B, NUM_ACTIONS)

    ref = ref_forward(params, x)
    assert jnp.allclose(out, ref, rtol=5e-3, atol=5e-3), (out, ref)
    print("KERNEL_OK")
</pallas_src>

<mosaic_0001>
module attributes {stable_mosaic.version = 11 : i64} {
  func.func @fused_cnn_kernel(%arg0: i32, %arg1: memref<1x4x32x1024xbf16, #tpu.memory_space<vmem>>, %arg2: memref<16x32xf32, #tpu.memory_space<vmem>>, %arg3: memref<16x1xf32, #tpu.memory_space<vmem>>, %arg4: memref<4x8x16xf32, #tpu.memory_space<vmem>>, %arg5: memref<8x1xf32, #tpu.memory_space<vmem>>, %arg6: memref<1024x64xf32, #tpu.memory_space<vmem>>, %arg7: memref<1x64xf32, #tpu.memory_space<vmem>>, %arg8: memref<64x128xf32, #tpu.memory_space<vmem>>, %arg9: memref<1x128xf32, #tpu.memory_space<vmem>>, %arg10: memref<2x128xf32, #tpu.memory_space<vmem>>, %arg11: memref<2x8x128xf32, #tpu.memory_space<vmem>>) attributes {dimension_semantics = [#tpu.dimension_semantics<parallel>], iteration_bounds = array<i64: 1>, scalar_prefetch = 0 : i64, scratch_operands = 1 : i64, tpu.core_type = #tpu.core_type<tc>, window_params = [{transform_indices = @transform_0, window_bounds = array<i64: 1, 4, 32, 1024>}, {pipeline_mode = #tpu.pipeline_mode<synchronous>, transform_indices = @transform_1, window_bounds = array<i64: 16, 32>}, {pipeline_mode = #tpu.pipeline_mode<synchronous>, transform_indices = @transform_2, window_bounds = array<i64: 16, 1>}, {pipeline_mode = #tpu.pipeline_mode<synchronous>, transform_indices = @transform_3, window_bounds = array<i64: 4, 8, 16>}, {pipeline_mode = #tpu.pipeline_mode<synchronous>, transform_indices = @transform_4, window_bounds = array<i64: 8, 1>}, {pipeline_mode = #tpu.pipeline_mode<synchronous>, transform_indices = @transform_5, window_bounds = array<i64: 1024, 64>}, {pipeline_mode = #tpu.pipeline_mode<synchronous>, transform_indices = @transform_6, window_bounds = array<i64: 1, 64>}, {pipeline_mode = #tpu.pipeline_mode<synchronous>, transform_indices = @transform_7, window_bounds = array<i64: 64, 128>}, {pipeline_mode = #tpu.pipeline_mode<synchronous>, transform_indices = @transform_8, window_bounds = array<i64: 1, 128>}, {transform_indices = @transform_9, window_bounds = array<i64: 2, 128>}]} {
    %c0 = arith.constant 0 : index
    %c0_0 = arith.constant 0 : index
    %0 = vector.load %arg2[%c0, %c0_0] : memref<16x32xf32, #tpu.memory_space<vmem>>, vector<16x32xf32>
    %c0_1 = arith.constant 0 : index
    %c0_2 = arith.constant 0 : index
    %1 = vector.load %arg3[%c0_1, %c0_2] : memref<16x1xf32, #tpu.memory_space<vmem>>, vector<16x1xf32>
    %c0_3 = arith.constant 0 : index
    %c0_4 = arith.constant 0 : index
    %2 = vector.load %arg5[%c0_3, %c0_4] : memref<8x1xf32, #tpu.memory_space<vmem>>, vector<8x1xf32>
    %c0_5 = arith.constant 0 : index
    %c0_6 = arith.constant 0 : index
    %c0_7 = arith.constant 0 : index
    %c0_8 = arith.constant 0 : index
    %3 = vector.load %arg1[%c0_5, %c0_6, %c0_7, %c0_8] : memref<1x4x32x1024xbf16, #tpu.memory_space<vmem>>, vector<1x1x32x1024xbf16>
    %4 = vector.shape_cast %3 : vector<1x1x32x1024xbf16> to vector<32x1024xbf16>
    %5 = arith.extf %4 : vector<32x1024xbf16> to vector<32x1024xf32>
    %cst = arith.constant dense<0.000000e+00> : vector<16x1024xf32>
    %6 = tpu.matmul %0, %5, %cst {dimension_numbers = #tpu.dot_dimension_numbers<[1], [0], [0], [1], [0, 0, 1, 1], [], []>} : vector<16x32xf32>, vector<32x1024xf32>, vector<16x1024xf32> -> vector<16x1024xf32>
    %c0_9 = arith.constant 0 : index
    %c1 = arith.constant 1 : index
    %c0_10 = arith.constant 0 : index
    %c0_11 = arith.constant 0 : index
    %7 = vector.load %arg1[%c0_9, %c1, %c0_10, %c0_11] : memref<1x4x32x1024xbf16, #tpu.memory_space<vmem>>, vector<1x1x32x1024xbf16>
    %8 = vector.shape_cast %7 : vector<1x1x32x1024xbf16> to vector<32x1024xbf16>
    %9 = arith.extf %8 : vector<32x1024xbf16> to vector<32x1024xf32>
    %cst_12 = arith.constant dense<0.000000e+00> : vector<16x1024xf32>
    %10 = tpu.matmul %0, %9, %cst_12 {dimension_numbers = #tpu.dot_dimension_numbers<[1], [0], [0], [1], [0, 0, 1, 1], [], []>} : vector<16x32xf32>, vector<32x1024xf32>, vector<16x1024xf32> -> vector<16x1024xf32>
    %11 = arith.maximumf %6, %10 : vector<16x1024xf32>
    %c0_13 = arith.constant 0 : index
    %c2 = arith.constant 2 : index
    %c0_14 = arith.constant 0 : index
    %c0_15 = arith.constant 0 : index
    %12 = vector.load %arg1[%c0_13, %c2, %c0_14, %c0_15] : memref<1x4x32x1024xbf16, #tpu.memory_space<vmem>>, vector<1x1x32x1024xbf16>
    %13 = vector.shape_cast %12 : vector<1x1x32x1024xbf16> to vector<32x1024xbf16>
    %14 = arith.extf %13 : vector<32x1024xbf16> to vector<32x1024xf32>
    %cst_16 = arith.constant dense<0.000000e+00> : vector<16x1024xf32>
    %15 = tpu.matmul %0, %14, %cst_16 {dimension_numbers = #tpu.dot_dimension_numbers<[1], [0], [0], [1], [0, 0, 1, 1], [], []>} : vector<16x32xf32>, vector<32x1024xf32>, vector<16x1024xf32> -> vector<16x1024xf32>
    %16 = arith.maximumf %11, %15 : vector<16x1024xf32>
    %c0_17 = arith.constant 0 : index
    %c3 = arith.constant 3 : index
    %c0_18 = arith.constant 0 : index
    %c0_19 = arith.constant 0 : index
    %17 = vector.load %arg1[%c0_17, %c3, %c0_18, %c0_19] : memref<1x4x32x1024xbf16, #tpu.memory_space<vmem>>, vector<1x1x32x1024xbf16>
    %18 = vector.shape_cast %17 : vector<1x1x32x1024xbf16> to vector<32x1024xbf16>
    %19 = arith.extf %18 : vector<32x1024xbf16> to vector<32x1024xf32>
    %cst_20 = arith.constant dense<0.000000e+00> : vector<16x1024xf32>
    %20 = tpu.matmul %0, %19, %cst_20 {dimension_numbers = #tpu.dot_dimension_numbers<[1], [0], [0], [1], [0, 0, 1, 1], [], []>} : vector<16x32xf32>, vector<32x1024xf32>, vector<16x1024xf32> -> vector<16x1024xf32>
    %21 = arith.maximumf %16, %20 : vector<16x1024xf32>
    %22 = vector.broadcast %1 : vector<16x1xf32> to vector<16x1024xf32>
    %23 = arith.addf %21, %22 : vector<16x1024xf32>
    %cst_21 = arith.constant 0.000000e+00 : f32
    %24 = vector.broadcast %cst_21 : f32 to vector<16x1024xf32>
    %25 = arith.maximumf %23, %24 : vector<16x1024xf32>
    %26 = vector.extract_strided_slice %25 {offsets = [0, 0], sizes = [16, 256], strides = [1, 1]} : vector<16x1024xf32> to vector<16x256xf32>
    %27 = vector.extract_strided_slice %25 {offsets = [0, 256], sizes = [16, 256], strides = [1, 1]} : vector<16x1024xf32> to vector<16x256xf32>
    %28 = vector.extract_strided_slice %25 {offsets = [0, 1], sizes = [16, 256], strides = [1, 1]} : vector<16x1024xf32> to vector<16x256xf32>
    %29 = vector.extract_strided_slice %25 {offsets = [0, 512], sizes = [16, 256], strides = [1, 1]} : vector<16x1024xf32> to vector<16x256xf32>
    %30 = vector.extract_strided_slice %25 {offsets = [0, 768], sizes = [16, 256], strides = [1, 1]} : vector<16x1024xf32> to vector<16x256xf32>
    %31 = vector.extract_strided_slice %25 {offsets = [0, 513], sizes = [16, 256], strides = [1, 1]} : vector<16x1024xf32> to vector<16x256xf32>
    %32 = vector.extract_strided_slice %25 {offsets = [0, 11], sizes = [16, 256], strides = [1, 1]} : vector<16x1024xf32> to vector<16x256xf32>
    %33 = vector.extract_strided_slice %25 {offsets = [0, 267], sizes = [16, 256], strides = [1, 1]} : vector<16x1024xf32> to vector<16x256xf32>
    %34 = vector.extract_strided_slice %25 {offsets = [0, 12], sizes = [16, 256], strides = [1, 1]} : vector<16x1024xf32> to vector<16x256xf32>
    %c0_22 = arith.constant 0 : index
    %c0_23 = arith.constant 0 : index
    %c0_24 = arith.constant 0 : index
    %35 = vector.load %arg4[%c0_22, %c0_23, %c0_24] : memref<4x8x16xf32, #tpu.memory_space<vmem>>, vector<1x8x16xf32>
    %36 = vector.shape_cast %35 : vector<1x8x16xf32> to vector<8x16xf32>
    %cst_25 = arith.constant dense<0.000000e+00> : vector<8x256xf32>
    %37 = tpu.matmul %36, %26, %cst_25 {dimension_numbers = #tpu.dot_dimension_numbers<[1], [0], [0], [1], [0, 0, 1, 1], [], []>} : vector<8x16xf32>, vector<16x256xf32>, vector<8x256xf32> -> vector<8x256xf32>
    %c1_26 = arith.constant 1 : index
    %c0_27 = arith.constant 0 : index
    %c0_28 = arith.constant 0 : index
    %38 = vector.load %arg4[%c1_26, %c0_27, %c0_28] : memref<4x8x16xf32, #tpu.memory_space<vmem>>, vector<1x8x16xf32>
    %39 = vector.shape_cast %38 : vector<1x8x16xf32> to vector<8x16xf32>
    %cst_29 = arith.constant dense<0.000000e+00> : vector<8x256xf32>
    %40 = tpu.matmul %39, %27, %cst_29 {dimension_numbers = #tpu.dot_dimension_numbers<[1], [0], [0], [1], [0, 0, 1, 1], [], []>} : vector<8x16xf32>, vector<16x256xf32>, vector<8x256xf32> -> vector<8x256xf32>
    %41 = arith.addf %37, %40 : vector<8x256xf32>
    %c2_30 = arith.constant 2 : index
    %c0_31 = arith.constant 0 : index
    %c0_32 = arith.constant 0 : index
    %42 = vector.load %arg4[%c2_30, %c0_31, %c0_32] : memref<4x8x16xf32, #tpu.memory_space<vmem>>, vector<1x8x16xf32>
    %43 = vector.shape_cast %42 : vector<1x8x16xf32> to vector<8x16xf32>
    %cst_33 = arith.constant dense<0.000000e+00> : vector<8x256xf32>
    %44 = tpu.matmul %43, %29, %cst_33 {dimension_numbers = #tpu.dot_dimension_numbers<[1], [0], [0], [1], [0, 0, 1, 1], [], []>} : vector<8x16xf32>, vector<16x256xf32>, vector<8x256xf32> -> vector<8x256xf32>
    %45 = arith.addf %41, %44 : vector<8x256xf32>
    %c3_34 = arith.constant 3 : index
    %c0_35 = arith.constant 0 : index
    %c0_36 = arith.constant 0 : index
    %46 = vector.load %arg4[%c3_34, %c0_35, %c0_36] : memref<4x8x16xf32, #tpu.memory_space<vmem>>, vector<1x8x16xf32>
    %47 = vector.shape_cast %46 : vector<1x8x16xf32> to vector<8x16xf32>
    %cst_37 = arith.constant dense<0.000000e+00> : vector<8x256xf32>
    %48 = tpu.matmul %47, %30, %cst_37 {dimension_numbers = #tpu.dot_dimension_numbers<[1], [0], [0], [1], [0, 0, 1, 1], [], []>} : vector<8x16xf32>, vector<16x256xf32>, vector<8x256xf32> -> vector<8x256xf32>
    %49 = arith.addf %45, %48 : vector<8x256xf32>
    %c0_38 = arith.constant 0 : index
    %c0_39 = arith.constant 0 : index
    %c0_40 = arith.constant 0 : index
    %50 = vector.load %arg4[%c0_38, %c0_39, %c0_40] : memref<4x8x16xf32, #tpu.memory_space<vmem>>, vector<1x8x16xf32>
    %51 = vector.shape_cast %50 : vector<1x8x16xf32> to vector<8x16xf32>
    %cst_41 = arith.constant dense<0.000000e+00> : vector<8x256xf32>
    %52 = tpu.matmul %51, %27, %cst_41 {dimension_numbers = #tpu.dot_dimension_numbers<[1], [0], [0], [1], [0, 0, 1, 1], [], []>} : vector<8x16xf32>, vector<16x256xf32>, vector<8x256xf32> -> vector<8x256xf32>
    %c1_42 = arith.constant 1 : index
    %c0_43 = arith.constant 0 : index
    %c0_44 = arith.constant 0 : index
    %53 = vector.load %arg4[%c1_42, %c0_43, %c0_44] : memref<4x8x16xf32, #tpu.memory_space<vmem>>, vector<1x8x16xf32>
    %54 = vector.shape_cast %53 : vector<1x8x16xf32> to vector<8x16xf32>
    %cst_45 = arith.constant dense<0.000000e+00> : vector<8x256xf32>
    %55 = tpu.matmul %54, %28, %cst_45 {dimension_numbers = #tpu.dot_dimension_numbers<[1], [0], [0], [1], [0, 0, 1, 1], [], []>} : vector<8x16xf32>, vector<16x256xf32>, vector<8x256xf32> -> vector<8x256xf32>
    %56 = arith.addf %52, %55 : vector<8x256xf32>
    %c2_46 = arith.constant 2 : index
    %c0_47 = arith.constant 0 : index
    %c0_48 = arith.constant 0 : index
    %57 = vector.load %arg4[%c2_46, %c0_47, %c0_48] : memref<4x8x16xf32, #tpu.memory_space<vmem>>, vector<1x8x16xf32>
    %58 = vector.shape_cast %57 : vector<1x8x16xf32> to vector<8x16xf32>
    %cst_49 = arith.constant dense<0.000000e+00> : vector<8x256xf32>
    %59 = tpu.matmul %58, %30, %cst_49 {dimension_numbers = #tpu.dot_dimension_numbers<[1], [0], [0], [1], [0, 0, 1, 1], [], []>} : vector<8x16xf32>, vector<16x256xf32>, vector<8x256xf32> -> vector<8x256xf32>
    %60 = arith.addf %56, %59 : vector<8x256xf32>
    %c3_50 = arith.constant 3 : index
    %c0_51 = arith.constant 0 : index
    %c0_52 = arith.constant 0 : index
    %61 = vector.load %arg4[%c3_50, %c0_51, %c0_52] : memref<4x8x16xf32, #tpu.memory_space<vmem>>, vector<1x8x16xf32>
    %62 = vector.shape_cast %61 : vector<1x8x16xf32> to vector<8x16xf32>
    %cst_53 = arith.constant dense<0.000000e+00> : vector<8x256xf32>
    %63 = tpu.matmul %62, %31, %cst_53 {dimension_numbers = #tpu.dot_dimension_numbers<[1], [0], [0], [1], [0, 0, 1, 1], [], []>} : vector<8x16xf32>, vector<16x256xf32>, vector<8x256xf32> -> vector<8x256xf32>
    %64 = arith.addf %60, %63 : vector<8x256xf32>
    %65 = arith.maximumf %49, %64 : vector<8x256xf32>
    %c0_54 = arith.constant 0 : index
    %c0_55 = arith.constant 0 : index
    %c0_56 = arith.constant 0 : index
    %66 = vector.load %arg4[%c0_54, %c0_55, %c0_56] : memref<4x8x16xf32, #tpu.memory_space<vmem>>, vector<1x8x16xf32>
    %67 = vector.shape_cast %66 : vector<1x8x16xf32> to vector<8x16xf32>
    %cst_57 = arith.constant dense<0.000000e+00> : vector<8x256xf32>
    %68 = tpu.matmul %67, %29, %cst_57 {dimension_numbers = #tpu.dot_dimension_numbers<[1], [0], [0], [1], [0, 0, 1, 1], [], []>} : vector<8x16xf32>, vector<16x256xf32>, vector<8x256xf32> -> vector<8x256xf32>
    %c1_58 = arith.constant 1 : index
    %c0_59 = arith.constant 0 : index
    %c0_60 = arith.constant 0 : index
    %69 = vector.load %arg4[%c1_58, %c0_59, %c0_60] : memref<4x8x16xf32, #tpu.memory_space<vmem>>, vector<1x8x16xf32>
    %70 = vector.shape_cast %69 : vector<1x8x16xf32> to vector<8x16xf32>
    %cst_61 = arith.constant dense<0.000000e+00> : vector<8x256xf32>
    %71 = tpu.matmul %70, %30, %cst_61 {dimension_numbers = #tpu.dot_dimension_numbers<[1], [0], [0], [1], [0, 0, 1, 1], [], []>} : vector<8x16xf32>, vector<16x256xf32>, vector<8x256xf32> -> vector<8x256xf32>
    %72 = arith.addf %68, %71 : vector<8x256xf32>
    %c2_62 = arith.constant 2 : index
    %c0_63 = arith.constant 0 : index
    %c0_64 = arith.constant 0 : index
    %73 = vector.load %arg4[%c2_62, %c0_63, %c0_64] : memref<4x8x16xf32, #tpu.memory_space<vmem>>, vector<1x8x16xf32>
    %74 = vector.shape_cast %73 : vector<1x8x16xf32> to vector<8x16xf32>
    %cst_65 = arith.constant dense<0.000000e+00> : vector<8x256xf32>
    %75 = tpu.matmul %74, %32, %cst_65 {dimension_numbers = #tpu.dot_dimension_numbers<[1], [0], [0], [1], [0, 0, 1, 1], [], []>} : vector<8x16xf32>, vector<16x256xf32>, vector<8x256xf32> -> vector<8x256xf32>
    %76 = arith.addf %72, %75 : vector<8x256xf32>
    %c3_66 = arith.constant 3 : index
    %c0_67 = arith.constant 0 : index
    %c0_68 = arith.constant 0 : index
    %77 = vector.load %arg4[%c3_66, %c0_67, %c0_68] : memref<4x8x16xf32, #tpu.memory_space<vmem>>, vector<1x8x16xf32>
    %78 = vector.shape_cast %77 : vector<1x8x16xf32> to vector<8x16xf32>
    %cst_69 = arith.constant dense<0.000000e+00> : vector<8x256xf32>
    %79 = tpu.matmul %78, %33, %cst_69 {dimension_numbers = #tpu.dot_dimension_numbers<[1], [0], [0], [1], [0, 0, 1, 1], [], []>} : vector<8x16xf32>, vector<16x256xf32>, vector<8x256xf32> -> vector<8x256xf32>
    %80 = arith.addf %76, %79 : vector<8x256xf32>
    %81 = arith.maximumf %65, %80 : vector<8x256xf32>
    %c0_70 = arith.constant 0 : index
    %c0_71 = arith.constant 0 : index
    %c0_72 = arith.constant 0 : index
    %82 = vector.load %arg4[%c0_70, %c0_71, %c0_72] : memref<4x8x16xf32, #tpu.memory_space<vmem>>, vector<1x8x16xf32>
    %83 = vector.shape_cast %82 : vector<1x8x16xf32> to vector<8x16xf32>
    %cst_73 = arith.constant dense<0.000000e+00> : vector<8x256xf32>
    %84 = tpu.matmul %83, %30, %cst_73 {dimension_numbers = #tpu.dot_dimension_numbers<[1], [0], [0], [1], [0, 0, 1, 1], [], []>} : vector<8x16xf32>, vector<16x256xf32>, vector<8x256xf32> -> vector<8x256xf32>
    %c1_74 = arith.constant 1 : index
    %c0_75 = arith.constant 0 : index
    %c0_76 = arith.constant 0 : index
    %85 = vector.load %arg4[%c1_74, %c0_75, %c0_76] : memref<4x8x16xf32, #tpu.memory_space<vmem>>, vector<1x8x16xf32>
    %86 = vector.shape_cast %85 : vector<1x8x16xf32> to vector<8x16xf32>
    %cst_77 = arith.constant dense<0.000000e+00> : vector<8x256xf32>
    %87 = tpu.matmul %86, %31, %cst_77 {dimension_numbers = #tpu.dot_dimension_numbers<[1], [0], [0], [1], [0, 0, 1, 1], [], []>} : vector<8x16xf32>, vector<16x256xf32>, vector<8x256xf32> -> vector<8x256xf32>
    %88 = arith.addf %84, %87 : vector<8x256xf32>
    %c2_78 = arith.constant 2 : index
    %c0_79 = arith.constant 0 : index
    %c0_80 = arith.constant 0 : index
    %89 = vector.load %arg4[%c2_78, %c0_79, %c0_80] : memref<4x8x16xf32, #tpu.memory_space<vmem>>, vector<1x8x16xf32>
    %90 = vector.shape_cast %89 : vector<1x8x16xf32> to vector<8x16xf32>
    %cst_81 = arith.constant dense<0.000000e+00> : vector<8x256xf32>
    %91 = tpu.matmul %90, %33, %cst_81 {dimension_numbers = #tpu.dot_dimension_numbers<[1], [0], [0], [1], [0, 0, 1, 1], [], []>} : vector<8x16xf32>, vector<16x256xf32>, vector<8x256xf32> -> vector<8x256xf32>
    %92 = arith.addf %88, %91 : vector<8x256xf32>
    %c3_82 = arith.constant 3 : index
    %c0_83 = arith.constant 0 : index
    %c0_84 = arith.constant 0 : index
    %93 = vector.load %arg4[%c3_82, %c0_83, %c0_84] : memref<4x8x16xf32, #tpu.memory_space<vmem>>, vector<1x8x16xf32>
    %94 = vector.shape_cast %93 : vector<1x8x16xf32> to vector<8x16xf32>
    %cst_85 = arith.constant dense<0.000000e+00> : vector<8x256xf32>
    %95 = tpu.matmul %94, %34, %cst_85 {dimension_numbers = #tpu.dot_dimension_numbers<[1], [0], [0], [1], [0, 0, 1, 1], [], []>} : vector<8x16xf32>, vector<16x256xf32>, vector<8x256xf32> -> vector<8x256xf32>
    %96 = arith.addf %92, %95 : vector<8x256xf32>
    %97 = arith.maximumf %81, %96 : vector<8x256xf32>
    %98 = vector.broadcast %2 : vector<8x1xf32> to vector<8x256xf32>
    %99 = arith.addf %97, %98 : vector<8x256xf32>
    %cst_86 = arith.constant 0.000000e+00 : f32
    %100 = vector.broadcast %cst_86 : f32 to vector<8x256xf32>
    %101 = arith.maximumf %99, %100 : vector<8x256xf32>
    %102 = vector.extract_strided_slice %101 {offsets = [0, 0], sizes = [8, 128], strides = [1, 1]} : vector<8x256xf32> to vector<8x128xf32>
    %c0_87 = arith.constant 0 : index
    %c0_88 = arith.constant 0 : index
    %c0_89 = arith.constant 0 : index
    %103 = vector.load %arg11[%c0_87, %c0_88, %c0_89] : memref<2x8x128xf32, #tpu.memory_space<vmem>>, vector<1x8x128xf32>
    %104 = vector.shape_cast %103 : vector<1x8x128xf32> to vector<8x128xf32>
    %105 = vector.shape_cast %102 : vector<8x128xf32> to vector<1x8x128xf32>
    tpu.vector_store %arg11[%c0_87, %c0_88, %c0_89], %105 {strides = array<i32>} : memref<2x8x128xf32, #tpu.memory_space<vmem>>, vector<1x8x128xf32>,
    %106 = vector.extract_strided_slice %101 {offsets = [0, 128], sizes = [8, 128], strides = [1, 1]} : vector<8x256xf32> to vector<8x128xf32>
    %c1_90 = arith.constant 1 : index
    %c0_91 = arith.constant 0 : index
    %c0_92 = arith.constant 0 : index
    %107 = vector.load %arg11[%c1_90, %c0_91, %c0_92] : memref<2x8x128xf32, #tpu.memory_space<vmem>>, vector<1x8x128xf32>
    %108 = vector.shape_cast %107 : vector<1x8x128xf32> to vector<8x128xf32>
    %109 = vector.shape_cast %106 : vector<8x128xf32> to vector<1x8x128xf32>
    tpu.vector_store %arg11[%c1_90, %c0_91, %c0_92], %109 {strides = array<i32>} : memref<2x8x128xf32, #tpu.memory_space<vmem>>, vector<1x8x128xf32>,
    %c0_93 = arith.constant 0 : index
    %c0_94 = arith.constant 0 : index
    %c0_95 = arith.constant 0 : index
    %110 = vector.load %arg11[%c0_93, %c0_94, %c0_95] : memref<2x8x128xf32, #tpu.memory_space<vmem>>, vector<2x1x128xf32>
    %111 = vector.shape_cast %110 : vector<2x1x128xf32> to vector<2x128xf32>
    %c0_96 = arith.constant 0 : index
    %c1_97 = arith.constant 1 : index
    %c0_98 = arith.constant 0 : index
    %112 = vector.load %arg11[%c0_96, %c1_97, %c0_98] : memref<2x8x128xf32, #tpu.memory_space<vmem>>, vector<2x1x128xf32>
    %113 = vector.shape_cast %112 : vector<2x1x128xf32> to vector<2x128xf32>
    %c0_99 = arith.constant 0 : index
    %c2_100 = arith.constant 2 : index
    %c0_101 = arith.constant 0 : index
    %114 = vector.load %arg11[%c0_99, %c2_100, %c0_101] : memref<2x8x128xf32, #tpu.memory_space<vmem>>, vector<2x1x128xf32>
    %115 = vector.shape_cast %114 : vector<2x1x128xf32> to vector<2x128xf32>
    %c0_102 = arith.constant 0 : index
    %c3_103 = arith.constant 3 : index
    %c0_104 = arith.constant 0 : index
    %116 = vector.load %arg11[%c0_102, %c3_103, %c0_104] : memref<2x8x128xf32, #tpu.memory_space<vmem>>, vector<2x1x128xf32>
    %117 = vector.shape_cast %116 : vector<2x1x128xf32> to vector<2x128xf32>
    %c0_105 = arith.constant 0 : index
    %c4 = arith.constant 4 : index
    %c0_106 = arith.constant 0 : index
    %118 = vector.load %arg11[%c0_105, %c4, %c0_106] : memref<2x8x128xf32, #tpu.memory_space<vmem>>, vector<2x1x128xf32>
    %119 = vector.shape_cast %118 : vector<2x1x128xf32> to vector<2x128xf32>
    %c0_107 = arith.constant 0 : index
    %c5 = arith.constant 5 : index
    %c0_108 = arith.constant 0 : index
    %120 = vector.load %arg11[%c0_107, %c5, %c0_108] : memref<2x8x128xf32, #tpu.memory_space<vmem>>, vector<2x1x128xf32>
    %121 = vector.shape_cast %120 : vector<2x1x128xf32> to vector<2x128xf32>
    %c0_109 = arith.constant 0 : index
    %c6 = arith.constant 6 : index
    %c0_110 = arith.constant 0 : index
    %122 = vector.load %arg11[%c0_109, %c6, %c0_110] : memref<2x8x128xf32, #tpu.memory_space<vmem>>, vector<2x1x128xf32>
    %123 = vector.shape_cast %122 : vector<2x1x128xf32> to vector<2x128xf32>
    %c0_111 = arith.constant 0 : index
    %c7 = arith.constant 7 : index
    %c0_112 = arith.constant 0 : index
    %124 = vector.load %arg11[%c0_111, %c7, %c0_112] : memref<2x8x128xf32, #tpu.memory_space<vmem>>, vector<2x1x128xf32>
    %125 = vector.shape_cast %124 : vector<2x1x128xf32> to vector<2x128xf32>
    %126 = tpu.concatenate %111, %113, %115, %117, %119, %121, %123, %125 in 1 : vector<2x128xf32>, vector<2x128xf32>, vector<2x128xf32>, vector<2x128xf32>, vector<2x128xf32>, vector<2x128xf32>, vector<2x128xf32>, vector<2x128xf32> -> vector<2x1024xf32>
    %c0_113 = arith.constant 0 : index
    %c0_114 = arith.constant 0 : index
    %127 = vector.load %arg6[%c0_113, %c0_114] : memref<1024x64xf32, #tpu.memory_space<vmem>>, vector<1024x64xf32>
    %cst_115 = arith.constant dense<0.000000e+00> : vector<2x64xf32>
    %128 = tpu.matmul %126, %127, %cst_115 {dimension_numbers = #tpu.dot_dimension_numbers<[1], [0], [0], [1], [0, 0, 1, 1], [], []>} : vector<2x1024xf32>, vector<1024x64xf32>, vector<2x64xf32> -> vector<2x64xf32>
    %c0_116 = arith.constant 0 : index
    %c0_117 = arith.constant 0 : index
    %129 = vector.load %arg7[%c0_116, %c0_117] : memref<1x64xf32, #tpu.memory_space<vmem>>, vector<1x64xf32>
    %130 = vector.broadcast %129 : vector<1x64xf32> to vector<2x64xf32>
    %131 = arith.addf %128, %130 : vector<2x64xf32>
    %cst_118 = arith.constant 0.000000e+00 : f32
    %132 = vector.broadcast %cst_118 : f32 to vector<2x64xf32>
    %133 = arith.maximumf %131, %132 : vector<2x64xf32>
    %c0_119 = arith.constant 0 : index
    %c0_120 = arith.constant 0 : index
    %134 = vector.load %arg8[%c0_119, %c0_120] : memref<64x128xf32, #tpu.memory_space<vmem>>, vector<64x128xf32>
    %cst_121 = arith.constant dense<0.000000e+00> : vector<2x128xf32>
    %135 = tpu.matmul %133, %134, %cst_121 {dimension_numbers = #tpu.dot_dimension_numbers<[1], [0], [0], [1], [0, 0, 1, 1], [], []>} : vector<2x64xf32>, vector<64x128xf32>, vector<2x128xf32> -> vector<2x128xf32>
    %c0_122 = arith.constant 0 : index
    %c0_123 = arith.constant 0 : index
    %136 = vector.load %arg9[%c0_122, %c0_123] : memref<1x128xf32, #tpu.memory_space<vmem>>, vector<1x128xf32>
    %137 = vector.broadcast %136 : vector<1x128xf32> to vector<2x128xf32>
    %138 = arith.addf %135, %137 : vector<2x128xf32>
    %c0_124 = arith.constant 0 : index
    %c0_125 = arith.constant 0 : index
    %139 = vector.load %arg10[%c0_124, %c0_125] : memref<2x128xf32, #tpu.memory_space<vmem>>, vector<2x128xf32>
    tpu.vector_store %arg10[%c0_124, %c0_125], %138 {strides = array<i32>} : memref<2x128xf32, #tpu.memory_space<vmem>>, vector<2x128xf32>,
    return
  }
  func.func @transform_0(%arg0: i32) -> (i32, i32, i32, i32) {
    %c0_i32 = arith.constant 0 : i32
    %c0_i32_0 = arith.constant 0 : i32
    %c0_i32_1 = arith.constant 0 : i32
    %c0_i32_2 = arith.constant 0 : i32
    return %arg0, %c0_i32, %c0_i32_0, %c0_i32_1 : i32, i32, i32, i32
  }
  func.func @transform_1(%arg0: i32) -> (i32, i32) {
    %c0_i32 = arith.constant 0 : i32
    %c0_i32_0 = arith.constant 0 : i32
    %c0_i32_1 = arith.constant 0 : i32
    return %c0_i32, %c0_i32_0 : i32, i32
  }
  func.func @transform_2(%arg0: i32) -> (i32, i32) {
    %c0_i32 = arith.constant 0 : i32
    %c0_i32_0 = arith.constant 0 : i32
    %c0_i32_1 = arith.constant 0 : i32
    return %c0_i32, %c0_i32_0 : i32, i32
  }
  func.func @transform_3(%arg0: i32) -> (i32, i32, i32) {
    %c0_i32 = arith.constant 0 : i32
    %c0_i32_0 = arith.constant 0 : i32
    %c0_i32_1 = arith.constant 0 : i32
    %c0_i32_2 = arith.constant 0 : i32
    return %c0_i32, %c0_i32_0, %c0_i32_1 : i32, i32, i32
  }
  func.func @transform_4(%arg0: i32) -> (i32, i32) {
    %c0_i32 = arith.constant 0 : i32
    %c0_i32_0 = arith.constant 0 : i32
    %c0_i32_1 = arith.constant 0 : i32
    return %c0_i32, %c0_i32_0 : i32, i32
  }
  func.func @transform_5(%arg0: i32) -> (i32, i32) {
    %c0_i32 = arith.constant 0 : i32
    %c0_i32_0 = arith.constant 0 : i32
    %c0_i32_1 = arith.constant 0 : i32
    return %c0_i32, %c0_i32_0 : i32, i32
  }
  func.func @transform_6(%arg0: i32) -> (i32, i32) {
    %c0_i32 = arith.constant 0 : i32
    %c0_i32_0 = arith.constant 0 : i32
    %c0_i32_1 = arith.constant 0 : i32
    return %c0_i32, %c0_i32_0 : i32, i32
  }
  func.func @transform_7(%arg0: i32) -> (i32, i32) {
    %c0_i32 = arith.constant 0 : i32
    %c0_i32_0 = arith.constant 0 : i32
    %c0_i32_1 = arith.constant 0 : i32
    return %c0_i32, %c0_i32_0 : i32, i32
  }
  func.func @transform_8(%arg0: i32) -> (i32, i32) {
    %c0_i32 = arith.constant 0 : i32
    %c0_i32_0 = arith.constant 0 : i32
    %c0_i32_1 = arith.constant 0 : i32
    return %c0_i32, %c0_i32_0 : i32, i32
  }
  func.func @transform_9(%arg0: i32) -> (i32, i32) {
    %c0_i32 = arith.constant 0 : i32
    %c0_i32_0 = arith.constant 0 : i32
    return %arg0, %c0_i32 : i32, i32
  }
}

</mosaic_0001>

<bundles_post_ra>
// kernel: forward.1
= control target key start
LH: loop header
LB: loop body
LE: loop exit
PB: predicated region body
PF: predicated region fallthrough
CT: control target
= control target key end

     0   :  { %v4235_v8 = vmov 0.0   ;;  %v4236_v14 = vmov 0   ;;  %vm86_vm0 = vcmask 261120   ;;  %s5205_s0 = inlined_call_operand.vmem [shape: bf16[1,4,32,1024], index: 0, kind: input, shape index: {}]   ;;  %s5206_s1 = inlined_call_operand.vmem [shape: f32[16,32], index: 1, kind: input, shape index: {}]   ;;  %s5207_s2 = inlined_call_operand.vmem [shape: f32[16,1], index: 2, kind: input, shape index: {}]   ;;  %s5208_s3 = inlined_call_operand.vmem [shape: f32[4,8,16], index: 3, kind: input, shape index: {}]   ;;  %s5209_s4 = inlined_call_operand.vmem [shape: f32[8,1], index: 4, kind: input, shape index: {}]   ;;  %s5210_s5 = inlined_call_operand.vmem [shape: f32[1024,64], index: 5, kind: input, shape index: {}]   ;;  %s5211_s6 = inlined_call_operand.vmem [shape: f32[1,64], index: 6, kind: input, shape index: {}]   ;;  %s5212_s7 = inlined_call_operand.vmem [shape: f32[64,128], index: 7, kind: input, shape index: {}]   ;;  %s5213_s8 = inlined_call_operand.vmem [shape: f32[1,128], index: 8, kind: input, shape index: {}]   ;;  %s5214_s9 = inlined_call_operand.hbm [shape: f32[2,128], index: 9, kind: output, shape index: {}]  }
   0x1   :  { %v38_v0 = vld [vmem:[%s5205_s0] sm:$0xff]  ;;  %v40_v2 = vld [vmem:[%s5205_s0 + $0x10] sm:$0xff]  ;;  %157 = vmatprep.mubr.f32.mxu1 %v4235_v8  ;;  %311 = vmatprep.mubr.f32.mxu0 %v4235_v8  ;;  %v39_v16 = vld [vmem:[%s5205_s0 + $0x8] sm:$0xff] }
   0x2   :  { %v42_v1 = vld [vmem:[%s5205_s0 + $0x20] sm:$0xff]  ;;  %v44_v4 = vld [vmem:[%s5205_s0 + $0x30] sm:$0xff]  ;;  %4140 = vset.pattern.permute.xlu0 %v4236_v14  ;;  %v43_v17 = vld [vmem:[%s5205_s0 + $0x28] sm:$0xff] }
   0x3   :  { %v4068_v3 = vcombine.high %v38_v0, %v42_v1  ;;  %v4069_v5 = vcombine.low %v38_v0, %v42_v1  ;;  %v46_v6 = vld [vmem:[%s5205_s0 + $0x40] sm:$0xff]  ;;  %v4076_v9 = vcombine.high %v40_v2, %v44_v4  ;;  %v4077_v10 = vcombine.low %v40_v2, %v44_v4  ;;  %v48_v12 = vld [vmem:[%s5205_s0 + $0x50] sm:$0xff]  ;;  %v47_v24 = vld [vmem:[%s5205_s0 + $0x48] sm:$0xff] }
   0x4   :  { %v50_v7 = vld [vmem:[%s5205_s0 + $0x60] sm:$0xff]  ;;  %v52_v13 = vld [vmem:[%s5205_s0 + $0x70] sm:$0xff]  ;;  %v4072_v22 = vcombine.high %v39_v16, %v43_v17  ;;  %v51_v25 = vld [vmem:[%s5205_s0 + $0x68] sm:$0xff]  ;;  %v4073_v27 = vcombine.low %v39_v16, %v43_v17 }
   0x5   :  { %v4070_v11 = vcombine.high %v46_v6, %v50_v7  ;;  %3713 = vmatprep.subr.bf16.mxu1 %v4068_v3  ;;  %v4078_v15 = vcombine.high %v48_v12, %v52_v13  ;;  %v3450_v18 = vld [vmem:[%s5205_s0 + $0x80] sm:$0xff]  ;;  %3729 = vmatprep.subr.bf16.mxu0 %v4076_v9  ;;  %v4071_v19 = vcombine.low %v46_v6, %v50_v7  ;;  %v41_v33 = vld [vmem:[%s5205_s0 + $0x18] sm:$0xff]  ;;  %v4361_v35 = vld [vmem:[%s5206_s1 + $0x8] sm:$0xff] }
   0x6   :  { %3715 = vmatpush1.bf16.msra.mxu1 %v4069_v5  ;;  %v3454_v20 = vld [vmem:[%s5205_s0 + $0xa0] sm:$0xff]  ;;  %3731 = vmatpush1.bf16.msra.mxu0 %v4077_v10  ;;  %v4079_v21 = vcombine.low %v48_v12, %v52_v13  ;;  %v4074_v31 = vcombine.high %v47_v24, %v51_v25  ;;  %v45_v34 = vld [vmem:[%s5205_s0 + $0x38] sm:$0xff]  ;;  %v4075_v36 = vcombine.low %v47_v24, %v51_v25  ;;  %v3452_v37 = vld [vmem:[%s5205_s0 + $0x90] sm:$0xff] }
   0x7   :  { %3717 = vmatprep.subr.bf16.mxu1 %v4070_v11  ;;  %3733 = vmatprep.subr.bf16.mxu0 %v4078_v15  ;;  %v4084_v23 = vcombine.high %v3450_v18, %v3454_v20  ;;  %v4340_v26 = vld [vmem:[%s5206_s1] sm:$0xff]  ;;  %v4085_v30 = vcombine.low %v3450_v18, %v3454_v20  ;;  %v3456_v38 = vld [vmem:[%s5205_s0 + $0xb0] sm:$0xff]  ;;  %v4080_v40 = vcombine.high %v41_v33, %v45_v34  ;;  %v49_v42 = vld [vmem:[%s5205_s0 + $0x58] sm:$0xff] }
   0x8   :  { %v3458_v28 = vld [vmem:[%s5205_s0 + $0xc0] sm:$0xff]  ;;  %v4092_v41 = vcombine.high %v3452_v37, %v3456_v38  ;;  %v53_v43 = vld [vmem:[%s5205_s0 + $0x78] sm:$0xff]  ;;  %v4081_v44 = vcombine.low %v41_v33, %v45_v34  ;;  %v3460_v45 = vld [vmem:[%s5205_s0 + $0xd0] sm:$0xff]  ;;  %v4093_v47 = vcombine.low %v3452_v37, %v3456_v38 }
   0x9   :  { %v3462_v29 = vld [vmem:[%s5205_s0 + $0xe0] sm:$0xff]  ;;  %v3464_v46 = vld [vmem:[%s5205_s0 + $0xf0] sm:$0xff]  ;;  %v4082_v48 = vcombine.high %v49_v42, %v53_v43  ;;  %v3451_v50 = vld [vmem:[%s5205_s0 + $0x88] sm:$0xff]  ;;  %v4083_v52 = vcombine.low %v49_v42, %v53_v43 }
   0xa   :  { %3719 = vmatpush1.bf16.msra.mxu1 %v4071_v19  ;;  %3735 = vmatpush1.bf16.msra.mxu0 %v4079_v21  ;;  %v4086_v32 = vcombine.high %v3458_v28, %v3462_v29  ;;  %v4087_v39 = vcombine.low %v3458_v28, %v3462_v29  ;;  %v4094_v49 = vcombine.high %v3460_v45, %v3464_v46  ;;  %v3455_v51 = vld [vmem:[%s5205_s0 + $0xa8] sm:$0xff]  ;;  %v3474_v53 = vld [vmem:[%s5205_s0 + $0x100] sm:$0xff] }
   0xb   :  { %3721 = vmatprep.subr.bf16.mxu1 %v4072_v22  ;;  %3745 = vmatprep.subr.bf16.mxu0 %v4084_v23  ;;  %v3478_v54 = vld [vmem:[%s5205_s0 + $0x120] sm:$0xff]  ;;  %v4095_v55 = vcombine.low %v3460_v45, %v3464_v46  ;;  %v4088_v56 = vcombine.high %v3451_v50, %v3455_v51 }
   0xd   :  { %3442 = vmatmul.mubr.msk.f32.vlgmr.msra.gmra.mrb[0].mxu1 %vm86_vm0, %v4340_v26  ;;  %3446 = vmatmul.mubr.msk.f32.vlgmr.msra.gmra.mrb[0].mxu0 %vm86_vm0, %v4340_v26 }
   0xe   :  { %3723 = vmatpush1.bf16.msra.mxu1 %v4073_v27  ;;  %3747 = vmatpush1.bf16.msra.mxu0 %v4085_v30 }
   0xf   :  { %163 = vmatprep.mubr.f32.mxu1 %v4235_v8  ;;  %317 = vmatprep.mubr.f32.mxu0 %v4235_v8 }
  0x10   :  { %3725 = vmatprep.subr.bf16.mxu1 %v4074_v31  ;;  %3749 = vmatprep.subr.bf16.mxu0 %v4086_v32 }
  0x11   :  { %3443 = vmatmul.mubr.msk.f32.gmra.mrb[2].mxu1 %vm86_vm0, %v4361_v35  ;;  %3447 = vmatmul.mubr.msk.f32.gmra.mrb[2].mxu0 %vm86_vm0, %v4361_v35 }
  0x12   :  { %3727 = vmatpush1.bf16.msra.mxu1 %v4075_v36  ;;  %3751 = vmatpush1.bf16.msra.mxu0 %v4087_v39 }
  0x13   :  { %234 = vmatprep.mubr.f32.mxu1 %v4235_v8  ;;  %514 = vmatprep.mubr.f32.mxu0 %v4235_v8 }
  0x14   :  { %3737 = vmatprep.subr.bf16.mxu1 %v4080_v40  ;;  %3761 = vmatprep.subr.bf16.mxu0 %v4092_v41 }
  0x15   :  { %3444 = vmatmul.mubr.msk.f32.vlgmr.msra.gmra.mrb[4].mxu1 %vm86_vm0, %v4340_v26  ;;  %3466 = vmatmul.mubr.msk.f32.vlgmr.msra.gmra.mrb[4].mxu0 %vm86_vm0, %v4340_v26 }
  0x16   :  { %3739 = vmatpush1.bf16.msra.mxu1 %v4081_v44  ;;  %3763 = vmatpush1.bf16.msra.mxu0 %v4093_v47 }
  0x17   :  { %240 = vmatprep.mubr.f32.mxu1 %v4235_v8  ;;  %520 = vmatprep.mubr.f32.mxu0 %v4235_v8 }
  0x18   :  { %3741 = vmatprep.subr.bf16.mxu1 %v4082_v48 }
  0x19   :  { %14 = vsyncpa [#allocation4], 0  ;;  %3445 = vmatmul.mubr.msk.f32.gmra.mrb[6].mxu1 %vm86_vm0, %v4361_v35  ;;  %3765 = vmatprep.subr.bf16.mxu0 %v4094_v49  ;;  %v4100_v57 = vcombine.high %v3474_v53, %v3478_v54  ;;  %v3459_v58 = vld [vmem:[%s5205_s0 + $0xc8] sm:$0xff]  ;;  %v4089_v60 = vcombine.low %v3451_v50, %v3455_v51  ;;  %v3482_v61 = vld [vmem:[%s5205_s0 + $0x140] sm:$0xff]  ;;  %v4101_v63 = vcombine.low %v3474_v53, %v3478_v54  ;;  %vm1565_vm1 = vcmask 130048   ;;  %s4238_s17 = smov 117  }
  0x1a   :  { %v3463_v59 = vld [vmem:[%s5205_s0 + $0xe8] sm:$0xff]  ;;  %3467 = vmatmul.mubr.msk.f32.gmra.mrb[6].mxu0 %vm86_vm0, %v4361_v35  ;;  %3743 = vmatpush1.bf16.msra.mxu1 %v4083_v52  ;;  %v3486_v62 = vld [vmem:[%s5205_s0 + $0x160] sm:$0xff]  ;;  %v3453_v2 = vld [vmem:[%s5205_s0 + $0x98] sm:$0xff]  ;;  %s4239_s20 = smov 116   ;;  %vm1888_vm2 = vcmask 1039360   ;;  %vm2367_vm3 = vcmask 957440  }
  0x1b   :  { %3767 = vmatpush1.bf16.msra.mxu0 %v4095_v55  ;;  %388 = vmatprep.mubr.f32.mxu1 %v4235_v8  ;;  %v4090_v0 = vcombine.high %v3459_v58, %v3463_v59  ;;  %v4102_v1 = vcombine.high %v3482_v61, %v3486_v62  ;;  %v3457_v3 = vld [vmem:[%s5205_s0 + $0xb8] sm:$0xff]  ;;  %v4091_v4 = vcombine.low %v3459_v58, %v3463_v59  ;;  %v3476_v5 = vld [vmem:[%s5205_s0 + $0x110] sm:$0xff]  ;;  %v3475_v19 = vld [vmem:[%s5205_s0 + $0x108] sm:$0xff]  ;;  %vm2769_vm4 = vcmask 949248  }
  0x1c   :  { %668 = vmatprep.mubr.f32.mxu0 %v4235_v8  ;;  %3753 = vmatprep.subr.bf16.mxu1 %v4088_v56  ;;  %v3480_v6 = vld [vmem:[%s5205_s0 + $0x130] sm:$0xff]  ;;  %v4103_v7 = vcombine.low %v3482_v61, %v3486_v62  ;;  %v4096_v9 = vcombine.high %v3453_v2, %v3457_v3  ;;  %v3461_v11 = vld [vmem:[%s5205_s0 + $0xd8] sm:$0xff]  ;;  %v4097_v13 = vcombine.low %v3453_v2, %v3457_v3  ;;  %v3479_v20 = vld [vmem:[%s5205_s0 + $0x128] sm:$0xff]  ;;  %vm2884_vm5 = vcmask 1041409  }
  0x1d   :  { %3448 = vmatmul.mubr.msk.f32.vlgmr.msra.gmra.mrb[8].mxu1 %vm86_vm0, %v4340_v26  ;;  %3777 = vmatprep.subr.bf16.mxu0 %v4100_v57  ;;  %v4108_v10 = vcombine.high %v3476_v5, %v3480_v6  ;;  %v3465_v12 = vld [vmem:[%s5205_s0 + $0xf8] sm:$0xff]  ;;  %v3484_v14 = vld [vmem:[%s5205_s0 + $0x150] sm:$0xff]  ;;  %v4109_v16 = vcombine.low %v3476_v5, %v3480_v6  ;;  %v3498_v22 = vld [vmem:[%s5205_s0 + $0x180] sm:$0xff]  ;;  %v4104_v25 = vcombine.high %v3475_v19, %v3479_v20  ;;  %vm4241_vm6 = vmmov 0  }
  0x1e   :  { %3470 = vmatmul.mubr.msk.f32.vlgmr.msra.gmra.mrb[8].mxu0 %vm86_vm0, %v4340_v26  ;;  %3755 = vmatpush1.bf16.msra.mxu1 %v4089_v60  ;;  %v3488_v15 = vld [vmem:[%s5205_s0 + $0x170] sm:$0xff]  ;;  %v4098_v17 = vcombine.high %v3461_v11, %v3465_v12  ;;  %v4099_v21 = vcombine.low %v3461_v11, %v3465_v12  ;;  %v3502_v23 = vld [vmem:[%s5205_s0 + $0x1a0] sm:$0xff]  ;;  %v3483_v28 = vld [vmem:[%s5205_s0 + $0x148] sm:$0xff]  ;;  %v4105_v30 = vcombine.low %v3475_v19, %v3479_v20  ;;  %vm3353_vm7 = vcmask 523264  }
  0x1f   :  { %3779 = vmatpush1.bf16.msra.mxu0 %v4101_v63  ;;  %394 = vmatprep.mubr.f32.mxu1 %v4235_v8  ;;  %v4110_v18 = vcombine.high %v3484_v14, %v3488_v15  ;;  %v4111_v24 = vcombine.low %v3484_v14, %v3488_v15  ;;  %v4116_v27 = vcombine.high %v3498_v22, %v3502_v23  ;;  %v3487_v29 = vld [vmem:[%s5205_s0 + $0x168] sm:$0xff]  ;;  %v3506_v31 = vld [vmem:[%s5205_s0 + $0x1c0] sm:$0xff]  ;;  %v3477_v37 = vld [vmem:[%s5205_s0 + $0x118] sm:$0xff] }
  0x20   :  { %674 = vmatprep.mubr.f32.mxu0 %v4235_v8  ;;  %3757 = vmatprep.subr.bf16.mxu1 %v4090_v0  ;;  %v3510_v32 = vld [vmem:[%s5205_s0 + $0x1e0] sm:$0xff]  ;;  %v4117_v33 = vcombine.low %v3498_v22, %v3502_v23  ;;  %v4106_v34 = vcombine.high %v3483_v28, %v3487_v29  ;;  %v3481_v38 = vld [vmem:[%s5205_s0 + $0x138] sm:$0xff]  ;;  %v4107_v39 = vcombine.low %v3483_v28, %v3487_v29  ;;  %v3500_v40 = vld [vmem:[%s5205_s0 + $0x190] sm:$0xff] }
  0x21   :  { %3449 = vmatmul.mubr.msk.f32.gmra.mrb[10].mxu1 %vm86_vm0, %v4361_v35  ;;  %3781 = vmatprep.subr.bf16.mxu0 %v4102_v1  ;;  %v4118_v36 = vcombine.high %v3506_v31, %v3510_v32  ;;  %v3504_v41 = vld [vmem:[%s5205_s0 + $0x1b0] sm:$0xff]  ;;  %v4119_v42 = vcombine.low %v3506_v31, %v3510_v32  ;;  %v4112_v43 = vcombine.high %v3477_v37, %v3481_v38  ;;  %v3485_v45 = vld [vmem:[%s5205_s0 + $0x158] sm:$0xff]  ;;  %v3499_v53 = vld [vmem:[%s5205_s0 + $0x188] sm:$0xff] }
  0x22   :  { %3471 = vmatmul.mubr.msk.f32.gmra.mrb[10].mxu0 %vm86_vm0, %v4361_v35  ;;  %3759 = vmatpush1.bf16.msra.mxu1 %v4091_v4  ;;  %v4124_v44 = vcombine.high %v3500_v40, %v3504_v41  ;;  %v3489_v46 = vld [vmem:[%s5205_s0 + $0x178] sm:$0xff]  ;;  %v4113_v47 = vcombine.low %v3477_v37, %v3481_v38  ;;  %v3508_v48 = vld [vmem:[%s5205_s0 + $0x1d0] sm:$0xff]  ;;  %v4125_v50 = vcombine.low %v3500_v40, %v3504_v41  ;;  %v3503_v54 = vld [vmem:[%s5205_s0 + $0x1a8] sm:$0xff] }
  0x23   :  { %3783 = vmatpush1.bf16.msra.mxu0 %v4103_v7  ;;  %591 = vmatprep.mubr.f32.mxu1 %v4235_v8  ;;  %v3512_v49 = vld [vmem:[%s5205_s0 + $0x1f0] sm:$0xff]  ;;  %v4114_v51 = vcombine.high %v3485_v45, %v3489_v46  ;;  %v4115_v55 = vcombine.low %v3485_v45, %v3489_v46  ;;  %v4120_v57 = vcombine.high %v3499_v53, %v3503_v54  ;;  %v3507_v58 = vld [vmem:[%s5205_s0 + $0x1c8] sm:$0xff]  ;;  %v35_v61 = vld [vmem:[%s5207_s2] sm:$0xff] }
  0x24   :  { %887 = vmatprep.mubr.f32.mxu0 %v4235_v8  ;;  %3769 = vmatprep.subr.bf16.mxu1 %v4096_v9  ;;  %v4126_v52 = vcombine.high %v3508_v48, %v3512_v49  ;;  %v4127_v56 = vcombine.low %v3508_v48, %v3512_v49  ;;  %v3511_v59 = vld [vmem:[%s5205_s0 + $0x1e8] sm:$0xff]  ;;  %v4121_v60 = vcombine.low %v3499_v53, %v3503_v54  ;;  %v3501_v63 = vld [vmem:[%s5205_s0 + $0x198] sm:$0xff] }
  0x25   :  { %3468 = vmatmul.mubr.msk.f32.vlgmr.msra.gmra.mrb[12].mxu1 %vm86_vm0, %v4340_v26  ;;  %3793 = vmatprep.subr.bf16.mxu0 %v4108_v10  ;;  %v4122_v62 = vcombine.high %v3507_v58, %v3511_v59  ;;  %v3505_v0 = vld [vmem:[%s5205_s0 + $0x1b8] sm:$0xff]  ;;  %v4123_v1 = vcombine.low %v3507_v58, %v3511_v59  ;;  %v36_v2 = vld [vmem:[%s5207_s2 + $0x8] sm:$0xff] }
  0x26   :  { %3490 = vmatmul.mubr.msk.f32.vlgmr.msra.gmra.mrb[12].mxu0 %vm86_vm0, %v4340_v26  ;;  %3771 = vmatpush1.bf16.msra.mxu1 %v4097_v13  ;;  %v4128_v3 = vcombine.high %v3501_v63, %v3505_v0  ;;  %v3509_v4 = vld [vmem:[%s5205_s0 + $0x1d8] sm:$0xff]  ;;  %v4129_v6 = vcombine.low %v3501_v63, %v3505_v0 }
  0x27   :  { %3795 = vmatpush1.bf16.msra.mxu0 %v4109_v16  ;;  %597 = vmatprep.mubr.f32.mxu1 %v4235_v8  ;;  %v3513_v5 = vld [vmem:[%s5205_s0 + $0x1f8] sm:$0xff]  ;;  %s4237_s0 = smov 127  }
  0x28   :  { %893 = vmatprep.mubr.f32.mxu0 %v4235_v8  ;;  %3773 = vmatprep.subr.bf16.mxu1 %v4098_v17  ;;  %v4130_v7 = vcombine.high %v3509_v4, %v3513_v5  ;;  %v4131_v9 = vcombine.low %v3509_v4, %v3513_v5 }
  0x29   :  { %3469 = vmatmul.mubr.msk.f32.gmra.mrb[14].mxu1 %vm86_vm0, %v4361_v35  ;;  %3797 = vmatprep.subr.bf16.mxu0 %v4110_v18 }
  0x2a   :  { %3491 = vmatmul.mubr.msk.f32.gmra.mrb[14].mxu0 %vm86_vm0, %v4361_v35  ;;  %3775 = vmatpush1.bf16.msra.mxu1 %v4099_v21 }
  0x2b   :  { %3799 = vmatpush1.bf16.msra.mxu0 %v4111_v24  ;;  %745 = vmatprep.mubr.f32.mxu1 %v4235_v8 }
  0x2c   :  { %1041 = vmatprep.mubr.f32.mxu0 %v4235_v8  ;;  %3785 = vmatprep.subr.bf16.mxu1 %v4104_v25 }
  0x2d   :  { %3472 = vmatmul.mubr.msk.f32.vlgmr.msra.gmra.mrb[16].mxu1 %vm86_vm0, %v4340_v26  ;;  %3809 = vmatprep.subr.bf16.mxu0 %v4116_v27 }
  0x2e   :  { %3494 = vmatmul.mubr.msk.f32.vlgmr.msra.gmra.mrb[16].mxu0 %vm86_vm0, %v4340_v26  ;;  %3787 = vmatpush1.bf16.msra.mxu1 %v4105_v30 }
  0x2f   :  { %3811 = vmatpush1.bf16.msra.mxu0 %v4117_v33  ;;  %751 = vmatprep.mubr.f32.mxu1 %v4235_v8 }
  0x30   :  { %1047 = vmatprep.mubr.f32.mxu0 %v4235_v8  ;;  %3789 = vmatprep.subr.bf16.mxu1 %v4106_v34 }
  0x31   :  { %3473 = vmatmul.mubr.msk.f32.gmra.mrb[18].mxu1 %vm86_vm0, %v4361_v35  ;;  %3813 = vmatprep.subr.bf16.mxu0 %v4118_v36 }
  0x32   :  { %3495 = vmatmul.mubr.msk.f32.gmra.mrb[18].mxu0 %vm86_vm0, %v4361_v35  ;;  %3791 = vmatpush1.bf16.msra.mxu1 %v4107_v39 }
  0x33   :  { %3815 = vmatpush1.bf16.msra.mxu0 %v4119_v42  ;;  %964 = vmatprep.mubr.f32.mxu1 %v4235_v8 }
  0x34   :  { %1260 = vmatprep.mubr.f32.mxu0 %v4235_v8  ;;  %3801 = vmatprep.subr.bf16.mxu1 %v4112_v43 }
  0x35   :  { %3492 = vmatmul.mubr.msk.f32.vlgmr.msra.gmra.mrb[20].mxu1 %vm86_vm0, %v4340_v26  ;;  %3825 = vmatprep.subr.bf16.mxu0 %v4124_v44 }
  0x36   :  { %3514 = vmatmul.mubr.msk.f32.vlgmr.msra.gmra.mrb[20].mxu0 %vm86_vm0, %v4340_v26  ;;  %3803 = vmatpush1.bf16.msra.mxu1 %v4113_v47 }
  0x37   :  { %3827 = vmatpush1.bf16.msra.mxu0 %v4125_v50  ;;  %970 = vmatprep.mubr.f32.mxu1 %v4235_v8 }
  0x38   :  { %1266 = vmatprep.mubr.f32.mxu0 %v4235_v8  ;;  %3805 = vmatprep.subr.bf16.mxu1 %v4114_v51 }
  0x39   :  { %3493 = vmatmul.mubr.msk.f32.gmra.mrb[22].mxu1 %vm86_vm0, %v4361_v35  ;;  %3829 = vmatprep.subr.bf16.mxu0 %v4126_v52 }
  0x3a   :  { %3515 = vmatmul.mubr.msk.f32.gmra.mrb[22].mxu0 %vm86_vm0, %v4361_v35  ;;  %3807 = vmatpush1.bf16.msra.mxu1 %v4115_v55 }
  0x3b   :  { %3831 = vmatpush1.bf16.msra.mxu0 %v4127_v56  ;;  %1118 = vmatprep.mubr.f32.mxu1 %v4235_v8 }
  0x3c   :  { %1414 = vmatprep.mubr.f32.mxu0 %v4235_v8  ;;  %3817 = vmatprep.subr.bf16.mxu1 %v4120_v57 }
  0x3d   :  { %3496 = vmatmul.mubr.msk.f32.vlgmr.msra.gmra.mrb[24].mxu1 %vm86_vm0, %v4340_v26  ;;  %1522 = vperm.xlu0 %4140, %v35_v61  }
  0x3e   :  { %3518 = vmatmul.mubr.msk.f32.vlgmr.msra.gmra.mrb[24].mxu0 %vm86_vm0, %v4340_v26  ;;  %3819 = vmatpush1.bf16.msra.mxu1 %v4121_v60 }
  0x3f   :  { %1124 = vmatprep.mubr.f32.mxu1 %v4235_v8  ;;  %1420 = vmatprep.mubr.f32.mxu0 %v4235_v8 }
  0x40   :  { %3821 = vmatprep.subr.bf16.mxu1 %v4122_v62 }
  0x41   :  { %3497 = vmatmul.mubr.msk.f32.gmra.mrb[26].mxu1 %vm86_vm0, %v4361_v35  ;;  %1527 = vperm.xlu0 %4140, %v36_v2  }
  0x42   :  { %3519 = vmatmul.mubr.msk.f32.gmra.mrb[26].mxu0 %vm86_vm0, %v4361_v35  ;;  %3823 = vmatpush1.bf16.msra.mxu1 %v4123_v1 }
  0x43   :  { %1337 = vmatprep.mubr.f32.mxu1 %v4235_v8  ;;  %3833 = vmatprep.subr.bf16.mxu1 %v4128_v3 }
  0x44   :  { %1633 = vmatprep.mubr.f32.mxu0 %v4235_v8 }
  0x45   :  { %3516 = vmatmul.mubr.msk.f32.vlgmr.msra.gmra.mrb[28].mxu1 %vm86_vm0, %v4340_v26 }
  0x46   :  { %3835 = vmatpush1.bf16.msra.mxu1 %v4129_v6  ;;  %1343 = vmatprep.mubr.f32.mxu1 %v4235_v8 }
  0x47   :  { %3837 = vmatprep.subr.bf16.mxu1 %v4130_v7 }
  0x49   :  { %3517 = vmatmul.mubr.msk.f32.gmra.mrb[30].mxu1 %vm86_vm0, %v4361_v35 }
  0x4a   :  { %3839 = vmatpush1.bf16.msra.mxu1 %v4131_v9  ;;  %1491 = vmatprep.mubr.f32.mxu1 %v4235_v8 }
  0x4d   :  { %3520 = vmatmul.mubr.msk.f32.vlgmr.msra.gmra.mrb[32].mxu1 %vm86_vm0, %v4340_v26 }
  0x4e   :  { %1497 = vmatprep.mubr.f32.mxu1 %v4235_v8 }
  0x51   :  { %3521 = vmatmul.mubr.msk.f32.gmra.mrb[34].mxu1 %vm86_vm0, %v4361_v35 }
  0x52   :  { %1961 = vmatprep.mubr.f32.mxu1 %v4235_v8 }
  0xe0   :  { %v159_v10 = vpop.f32.mrb[0].mxu1  ;;  %v313_v12 = vpop.f32.mrb[0].mxu0 }
  0xe1   :  { %v161_v11 = vpop.f32.mrb[1].mxu1  ;;  %v315_v13 = vpop.f32.mrb[1].mxu0 }
  0xe4   :  { %v165_v14 = vpop.f32.mrb[2].mxu1  ;;  %v319_v16 = vpop.f32.mrb[2].mxu0 }
  0xe5   :  { %v167_v15 = vpop.f32.mrb[3].mxu1  ;;  %v321_v17 = vpop.f32.mrb[3].mxu0 }
  0xe8   :  { %v236_v18 = vpop.f32.mrb[4].mxu1  ;;  %v516_v19 = vpop.f32.mrb[4].mxu0 }
  0xe9   :  { %v238_v20 = vpop.f32.mrb[5].mxu1  ;;  %v758_v21 = vmax.f32 %v159_v10, %v516_v19  ;;  %v518_v26 = vpop.f32.mrb[5].mxu0 }
  0xea   :  { %v759_v22 = vmax.f32 %v161_v11, %v518_v26  ;;  %v4614_v10 = vpop.permute.xlu0 %1522 }
  0xec   :  { %v242_v23 = vpop.f32.mrb[6].mxu1 }
  0xed   :  { %v522_v24 = vpop.f32.mrb[6].mxu0  ;;  %v4599_v25 = vpop.f32.mrb[7].mxu1 }
  0xee   :  { %v766_v35 = vmax.f32 %v165_v14, %v522_v24  ;;  %v524_v27 = vpop.f32.mrb[7].mxu0 }
  0xef   :  { %v767_v28 = vmax.f32 %v167_v15, %v524_v27 }
  0xf0   :  { %v4601_v29 = vpop.f32.mrb[8].mxu1 }
  0xf1   :  { %v670_v30 = vpop.f32.mrb[8].mxu0  ;;  %v4603_v31 = vpop.f32.mrb[9].mxu1 }
  0xf2   :  { %v762_v32 = vmax.f32 %v313_v12, %v670_v30  ;;  %v672_v33 = vpop.f32.mrb[9].mxu0 }
  0xf3   :  { %v763_v34 = vmax.f32 %v315_v13, %v672_v33 }
  0xf4   :  { %v4605_v36 = vpop.f32.mrb[10].mxu1 }
  0xf5   :  { %v676_v37 = vpop.f32.mrb[10].mxu0  ;;  %v4607_v38 = vpop.f32.mrb[11].mxu1 }
  0xf6   :  { %v770_v39 = vmax.f32 %v319_v16, %v676_v37  ;;  %v678_v40 = vpop.f32.mrb[11].mxu0 }
  0xf7   :  { %v771_v41 = vmax.f32 %v321_v17, %v678_v40 }
  0xf8   :  { %v593_v42 = vpop.f32.mrb[12].mxu1 }
  0xf9   :  { %v760_v43 = vmax.f32 %v236_v18, %v593_v42  ;;  %v889_v44 = vpop.f32.mrb[12].mxu0  ;;  %v595_v45 = vpop.f32.mrb[13].mxu1 }
  0xfa   :  { %v1131_v46 = vmax.f32 %v758_v21, %v889_v44  ;;  %v761_v47 = vmax.f32 %v238_v20, %v595_v45  ;;  %v891_v48 = vpop.f32.mrb[13].mxu0  ;;  %v4616_v21 = vpop.permute.xlu0 %1527 }
  0xfb   :  { %v1132_v49 = vmax.f32 %v759_v22, %v891_v48 }
  0xfc   :  { %v599_v50 = vpop.f32.mrb[14].mxu1 }
  0xfd   :  { %v768_v51 = vmax.f32 %v242_v23, %v599_v50  ;;  %v895_v52 = vpop.f32.mrb[14].mxu0  ;;  %v601_v53 = vpop.f32.mrb[15].mxu1 }
  0xfe   :  { %v1139_v54 = vmax.f32 %v766_v35, %v895_v52  ;;  %v769_v55 = vmax.f32 %v4599_v25, %v601_v53  ;;  %v897_v56 = vpop.f32.mrb[15].mxu0 }
  0xff   :  { %v1140_v57 = vmax.f32 %v767_v28, %v897_v56 }
 0x100   :  { %v747_v58 = vpop.f32.mrb[16].mxu1 }
 0x101   :  { %v764_v59 = vmax.f32 %v4601_v29, %v747_v58  ;;  %v1043_v60 = vpop.f32.mrb[16].mxu0  ;;  %v749_v61 = vpop.f32.mrb[17].mxu1 }
 0x102   :  { %v1135_v62 = vmax.f32 %v762_v32, %v1043_v60  ;;  %v765_v63 = vmax.f32 %v4603_v31, %v749_v61  ;;  %v1045_v0 = vpop.f32.mrb[17].mxu0 }
 0x103   :  { %v1136_v1 = vmax.f32 %v763_v34, %v1045_v0 }
 0x104   :  { %v753_v2 = vpop.f32.mrb[18].mxu1 }
 0x105   :  { %v772_v3 = vmax.f32 %v4605_v36, %v753_v2  ;;  %v1049_v4 = vpop.f32.mrb[18].mxu0  ;;  %v755_v5 = vpop.f32.mrb[19].mxu1 }
 0x106   :  { %v1143_v6 = vmax.f32 %v770_v39, %v1049_v4  ;;  %v773_v7 = vmax.f32 %v4607_v38, %v755_v5  ;;  %v1051_v9 = vpop.f32.mrb[19].mxu0 }
 0x107   :  { %v1144_v11 = vmax.f32 %v771_v41, %v1051_v9 }
 0x108   :  { %v966_v12 = vpop.f32.mrb[20].mxu1 }
 0x109   :  { %v1133_v13 = vmax.f32 %v760_v43, %v966_v12  ;;  %v1262_v14 = vpop.f32.mrb[20].mxu0  ;;  %v968_v15 = vpop.f32.mrb[21].mxu1 }
 0x10a   :  { %v1504_v16 = vmax.f32 %v1131_v46, %v1262_v14  ;;  %v1134_v17 = vmax.f32 %v761_v47, %v968_v15  ;;  %v1264_v18 = vpop.f32.mrb[21].mxu0 }
 0x10b   :  { %v1505_v19 = vmax.f32 %v1132_v49, %v1264_v18 }
 0x10c   :  { %v972_v20 = vpop.f32.mrb[22].mxu1  ;;  %v1530_v27 = vadd.f32 %v4614_v10, %v1504_v16 }
 0x10d   :  { %v1141_v26 = vmax.f32 %v768_v51, %v972_v20  ;;  %v1268_v22 = vpop.f32.mrb[22].mxu0  ;;  %v974_v23 = vpop.f32.mrb[23].mxu1  ;;  %v1531_v29 = vadd.f32 %v4614_v10, %v1505_v19 }
 0x10e   :  { %v1512_v24 = vmax.f32 %v1139_v54, %v1268_v22  ;;  %v1142_v25 = vmax.f32 %v769_v55, %v974_v23  ;;  %v1270_v35 = vpop.f32.mrb[23].mxu0  ;;  %v1546_v40 = vmax.f32 %v1530_v27, 0.0 }
 0x10f   :  { %v1513_v28 = vmax.f32 %v1140_v57, %v1270_v35  ;;  %v1547_v43 = vmax.f32 %v1531_v29, 0.0 }
 0x110   :  { %v1120_v30 = vpop.f32.mrb[24].mxu1  ;;  %v1538_v31 = vadd.f32 %v4616_v21, %v1512_v24 }
 0x111   :  { %v1137_v32 = vmax.f32 %v764_v59, %v1120_v30  ;;  %v1416_v33 = vpop.f32.mrb[24].mxu0  ;;  %v1122_v34 = vpop.f32.mrb[25].mxu1  ;;  %v1539_v36 = vadd.f32 %v4616_v21, %v1513_v28 }
 0x112   :  { %v1508_v37 = vmax.f32 %v1135_v62, %v1416_v33  ;;  %v4622_v38 = vmax.f32 %v765_v63, %v1122_v34  ;;  %v1418_v39 = vpop.f32.mrb[25].mxu0  ;;  %v1554_v41 = vmax.f32 %v1538_v31, 0.0 }
 0x113   :  { %v1509_v42 = vmax.f32 %v1136_v1, %v1418_v39  ;;  %v1555_v44 = vmax.f32 %v1539_v36, 0.0 }
 0x114   :  { %v1126_v45 = vpop.f32.mrb[26].mxu1  ;;  %v4624_v46 = vpack.i.bf16 %v1554_v41, %v1546_v40  ;;  %v4626_v47 = vpack.c.bf16 %v1554_v41, %v1546_v40  ;;  %v1534_v52 = vadd.f32 %v4614_v10, %v1508_v37  ;;  %v4657_v41 = vld [vmem:[%s5208_s3 + $0x8] sm:$0xff] }
 0x115   :  { %v1145_v48 = vmax.f32 %v772_v3, %v1126_v45  ;;  %v1422_v49 = vpop.f32.mrb[26].mxu0  ;;  %v1128_v50 = vpop.f32.mrb[27].mxu1  ;;  %v3844_v51 = vpack.c.bf16 %v1555_v44, %v1547_v43  ;;  %v1535_v56 = vadd.f32 %v4614_v10, %v1509_v42 }
 0x116   :  { %v1516_v53 = vmax.f32 %v1143_v6, %v1422_v49  ;;  %v1424_v54 = vpop.f32.mrb[27].mxu0  ;;  %4152 = vrot.lane.b32.xlu0 %v4624_v46, %s4237_s0  ;;  %v1146_v55 = vmax.f32 %v773_v7, %v1128_v50  ;;  %v1550_v63 = vmax.f32 %v1534_v52, 0.0  ;;  %v37_v50 = vld [vmem:[%s5209_s4] sm:$0xff] }
 0x117   :  { %v1517_v57 = vmax.f32 %v1144_v11, %v1424_v54  ;;  %v1551_v2 = vmax.f32 %v1535_v56, 0.0 }
 0x118   :  { %v1542_v58 = vadd.f32 %v4616_v21, %v1516_v53  ;;  %v1339_v59 = vpop.f32.mrb[28].mxu1 }
 0x119   :  { %v1543_v60 = vadd.f32 %v4616_v21, %v1517_v57  ;;  %v1506_v61 = vmax.f32 %v1133_v13, %v1339_v59  ;;  %v1341_v62 = vpop.f32.mrb[29].mxu1 }
 0x11a   :  { %v1558_v0 = vmax.f32 %v1542_v58, 0.0  ;;  %v1507_v1 = vmax.f32 %v1134_v17, %v1341_v62 }
 0x11b   :  { %v1559_v3 = vmax.f32 %v1543_v60, 0.0  ;;  %v1532_v4 = vadd.f32 %v4614_v10, %v1506_v61 }
 0x11c   :  { %v1533_v5 = vadd.f32 %v4614_v10, %v1507_v1  ;;  %v1345_v6 = vpop.f32.mrb[30].mxu1  ;;  %v4166_v7 = vpack.i.bf16 %v1558_v0, %v1550_v63  ;;  %v4636_v9 = vpack.c.bf16 %v1558_v0, %v1550_v63 }
 0x11d   :  { %v1548_v11 = vmax.f32 %v1532_v4, 0.0  ;;  %v1514_v12 = vmax.f32 %v1141_v26, %v1345_v6  ;;  %v1347_v14 = vpop.f32.mrb[31].mxu1  ;;  %v4638_v15 = vpack.c.bf16 %v1559_v3, %v1551_v2 }
 0x11e   :  { %v1549_v13 = vmax.f32 %v1533_v5, 0.0  ;;  %v1515_v16 = vmax.f32 %v1142_v25, %v1347_v14 }
 0x11f   :  { %v1540_v18 = vadd.f32 %v4616_v21, %v1514_v12  ;;  %v4141_v17 = vpack.i.bf16 %v1548_v11, %v1547_v43 }
 0x120   :  { %v1541_v19 = vadd.f32 %v4616_v21, %v1515_v16  ;;  %v1493_v20 = vpop.f32.mrb[32].mxu1  ;;  %v4186_v22 = vpack.i.bf16 %v1550_v63, %v1549_v13 }
 0x121   :  { %v1556_v23 = vmax.f32 %v1540_v18, 0.0  ;;  %v1510_v24 = vmax.f32 %v1137_v32, %v1493_v20  ;;  %4142 = vrot.lane.b32.xlu1 %v4141_v17, %s4237_s0  ;;  %v1495_v35 = vpop.f32.mrb[33].mxu1 }
 0x122   :  { %v1557_v27 = vmax.f32 %v1541_v19, 0.0  ;;  %v1511_v26 = vmax.f32 %v4622_v38, %v1495_v35 }
 0x123   :  { %v1536_v28 = vadd.f32 %v4614_v10, %v1510_v24  ;;  %v4146_v29 = vpack.i.bf16 %v1556_v23, %v1555_v44  ;;  %v4645_v30 = vpack.c.bf16 %v1556_v23, %v1548_v11 }
 0x124   :  { %v1499_v25 = vpop.f32.mrb[34].mxu1  ;;  %v4647_v31 = vpack.c.bf16 %v1557_v27, %v1549_v13  ;;  %v4191_v33 = vpack.i.bf16 %v1558_v0, %v1557_v27  ;;  %v1537_v37 = vadd.f32 %v4614_v10, %v1511_v26 }
 0x125   :  { %v1552_v34 = vmax.f32 %v1536_v28, 0.0  ;;  %v1518_v36 = vmax.f32 %v1145_v48, %v1499_v25  ;;  %4147 = vrot.lane.b32.xlu1 %v4146_v29, %s4237_s0  ;;  %v1501_v32 = vpop.f32.mrb[35].mxu1 }
 0x126   :  { %v1519_v39 = vmax.f32 %v1146_v55, %v1501_v32  ;;  %3841 = vmatprep.subr.bf16.mxu0 %v4647_v31  ;;  %v1553_v10 = vmax.f32 %v1537_v37, 0.0 }
 0x127   :  { %v1544_v38 = vadd.f32 %v4616_v21, %v1518_v36  ;;  %3843 = vmatpush1.bf16.msra.mxu0 %v4645_v30  ;;  %v4156_v40 = vpack.i.bf16 %v1552_v34, %v1551_v2 }
 0x128   :  { %v1545_v42 = vadd.f32 %v4616_v21, %v1519_v39  ;;  %3845 = vmatprep.subr.bf16.mxu0 %v3844_v51  ;;  %v4675_v21 = vld [vmem:[%s5208_s3] sm:$0xff]  ;;  %v4700_v51 = vld [vmem:[%s5208_s3 + $0x18] sm:$0xff] }
 0x129   :  { %v1560_v43 = vmax.f32 %v1544_v38, 0.0  ;;  %4157 = vrot.lane.b32.xlu1 %v4156_v40, %s4237_s0 }
 0x12a   :  { %v1561_v44 = vmax.f32 %v1545_v42, 0.0  ;;  %3523 = vmatmul.mubr.msk.f32.vlgmr.msra.gmra.mrb[28].mxu0 %vm1565_vm1, %v4657_v41 }
 0x12b   :  { %v4663_v45 = vpack.c.bf16 %v1560_v43, %v1552_v34  ;;  %3847 = vmatpush1.bf16.msra.mxu0 %v4626_v47  ;;  %v4161_v48 = vpack.i.bf16 %v1560_v43, %v1559_v3  ;;  %1707 = vmatprep.mubr.f32.mxu0 %v4235_v8  ;;  %v4686_v47 = vld [vmem:[%s5208_s3 + $0x10] sm:$0xff] }
 0x12c   :  { %v4667_v49 = vpack.c.bf16 %v1561_v44, %v1553_v10  ;;  %3849 = vmatprep.subr.bf16.mxu0 %v4638_v15 }
 0x12d   :  { %4167 = vrot.lane.b32.xlu1 %v4166_v7, %s4237_s0  ;;  %4162 = vrot.lane.b32.xlu0 %v4161_v48, %s4237_s0 }
 0x131   :  { %4177 = vrot.lane.b32.xlu1 %v4146_v29, %s4238_s17  ;;  %4172 = vrot.lane.b32.xlu0 %v4141_v17, %s4238_s17 }
 0x132   :  { %3524 = vmatmul.mubr.msk.f32.vlgmr.msra.gmra.mrb[28].mxu0 %vm1565_vm1, %v4675_v21 }
 0x133   :  { %3851 = vmatpush1.bf16.msra.mxu0 %v4636_v9  ;;  %1783 = vmatprep.mubr.f32.mxu0 %v4235_v8 }
 0x134   :  { %3853 = vmatprep.subr.bf16.mxu0 %v4667_v49 }
 0x135   :  { %4187 = vrot.lane.b32.xlu1 %v4186_v22, %s4238_s17  ;;  %4182 = vrot.lane.b32.xlu0 %v4624_v46, %s4238_s17 }
 0x139   :  { %4197 = vrot.lane.b32.xlu1 %v4141_v17, %s4239_s20  ;;  %4192 = vrot.lane.b32.xlu0 %v4191_v33, %s4238_s17 }
 0x13a   :  { %3526 = vmatmul.mubr.msk.f32.vlgmr.msra.gmra.mrb[28].mxu0 %vm1565_vm1, %v4686_v47 }
 0x13b   :  { %3855 = vmatpush1.bf16.msra.mxu0 %v4663_v45  ;;  %1861 = vmatprep.mubr.f32.mxu0 %v4235_v8 }
 0x13c   :  { %3873 = vmatprep.subr.bf16.mxu0 %v4667_v49 }
 0x13d   :  { %4207 = vrot.lane.b32.xlu1 %v4624_v46, %s4239_s20  ;;  %4202 = vrot.lane.b32.xlu0 %v4146_v29, %s4239_s20 }
 0x141   :  { %2855 = vperm.xlu0 %4140, %v37_v50  }
 0x142   :  { %3528 = vmatmul.mubr.msk.f32.vlgmr.msra.gmra.mrb[28].mxu0 %vm1565_vm1, %v4700_v51 }
 0x143   :  { %3875 = vmatpush1.bf16.msra.mxu0 %v4663_v45  ;;  %2277 = vmatprep.mubr.f32.mxu0 %v4235_v8 }
 0x144   :  { %3877 = vmatprep.subr.bf16.mxu0 %v4638_v15 }
 0x146   :  { %3533 = vmatmul.mubr.msk.f32.vlgmr.msra.gmra.mrb[30].mxu0 %vm1565_vm1, %v4657_v41 }
 0x147   :  { %3879 = vmatpush1.bf16.msra.mxu0 %v4636_v9  ;;  %2348 = vmatprep.mubr.f32.mxu0 %v4235_v8 }
 0x14e   :  { %3534 = vmatmul.mubr.msk.f32.vlgmr.msra.gmra.mrb[30].mxu0 %vm1565_vm1, %v4675_v21 }
 0x14f   :  { %2440 = vmatprep.mubr.f32.mxu0 %v4235_v8 }
 0x188   :  { %v4153_v52 = vpop.permute.xlu0 %4152 }
 0x189   :  { %v4155_v56 = vunpack.i.h.bf16 %v4153_v52  ;;  %v4154_v57 = vunpack.i.l.bf16 %v4153_v52 }
 0x193   :  { %v4143_v46 = vpop.permute.xlu1 %4142 }
 0x194   :  { %v4145_v53 = vunpack.i.h.bf16 %v4143_v46  ;;  %v4144_v54 = vunpack.i.l.bf16 %v4143_v46 }
 0x196   :  { %v1889_v60 = vsel %vm1888_vm2, %v4154_v57, %v4144_v54  ;;  %v1890_v62 = vsel %vm1888_vm2, %v4144_v54, %v4145_v53 }
 0x197   :  { %v4148_v55 = vpop.permute.xlu1 %4147 }
 0x198   :  { %v4150_v58 = vunpack.i.h.bf16 %v4148_v55  ;;  %v4149_v59 = vunpack.i.l.bf16 %v4148_v55 }
 0x19a   :  { %v1891_v61 = vsel %vm1888_vm2, %v4155_v56, %v4149_v59  ;;  %v1892_v63 = vsel %vm1888_vm2, %v4149_v59, %v4150_v58 }
 0x19b   :  { %v3858_v0 = vpack.c.bf16 %v1891_v61, %v1889_v60  ;;  %v4158_v1 = vpop.permute.xlu1 %4157  ;;  %v3856_v2 = vpack.c.bf16 %v1892_v63, %v1890_v62  ;;  %v2939_v63 = vld [vmem:[%s5210_s5 + $0x88] sm:$0xff] }
 0x19c   :  { %v4160_v7 = vunpack.i.h.bf16 %v4158_v1  ;;  %v4159_v9 = vunpack.i.l.bf16 %v4158_v1 }
 0x19d   :  { %3857 = vmatprep.subr.bf16.mxu1 %v3856_v2  ;;  %v2923_v2 = vld [vmem:[%s5210_s5 + $0x8] sm:$0xff] }
 0x19e   :  { %3859 = vmatpush1.bf16.msra.mxu1 %v3858_v0  ;;  %v2131_v27 = vsel %vm1888_vm2, %v4159_v9, %v4160_v7  ;;  %v2970_v0 = vld [vmem:[%s5210_s5 + $0x180] sm:$0xff]  ;;  %v2940_v7 = vld [vmem:[%s5210_s5 + $0x90] sm:$0xff] }
 0x19f   :  { %3861 = vmatprep.subr.bf16.mxu1 %v4647_v31  ;;  %v4168_v3 = vpop.permute.xlu1 %4167  ;;  %v4163_v4 = vpop.permute.xlu0 %4162 }
 0x1a0   :  { %v4165_v5 = vunpack.i.h.bf16 %v4163_v4  ;;  %v4164_v6 = vunpack.i.l.bf16 %v4163_v4  ;;  %v4170_v26 = vunpack.i.h.bf16 %v4168_v3  ;;  %v4169_v28 = vunpack.i.l.bf16 %v4168_v3 }
 0x1a1   :  { %3529 = vmatmul.mubr.msk.f32.vlgmr.msra.gmra.mrb[36].mxu1 %vm1565_vm1, %v4657_v41 }
 0x1a2   :  { %3863 = vmatpush1.bf16.msra.mxu1 %v4645_v30  ;;  %2032 = vmatprep.mubr.f32.mxu1 %v4235_v8  ;;  %v2133_v19 = vsel %vm1888_vm2, %v4164_v6, %v4165_v5  ;;  %v2130_v39 = vsel %vm1888_vm2, %v4169_v28, %v4159_v9  ;;  %v2132_v38 = vsel %vm1888_vm2, %v4170_v26, %v4164_v6  ;;  %v2954_v5 = vld [vmem:[%s5210_s5 + $0x100] sm:$0xff]  ;;  %v2955_v6 = vld [vmem:[%s5210_s5 + $0x108] sm:$0xff] }
 0x1a3   :  { %v4178_v11 = vpop.permute.xlu1 %4177  ;;  %v4173_v12 = vpop.permute.xlu0 %4172  ;;  %3865 = vmatprep.subr.bf16.mxu1 %v4667_v49  ;;  %v3868_v29 = vpack.c.bf16 %v2133_v19, %v2131_v27  ;;  %v3870_v50 = vpack.c.bf16 %v2132_v38, %v2130_v39  ;;  %v3938_v9 = vpack.c.bf16 %v2955_v6, %v2954_v5  ;;  %v2974_v28 = vld [vmem:[%s5210_s5 + $0x1a0] sm:$0xff]  ;;  %v2976_v39 = vld [vmem:[%s5210_s5 + $0x1b0] sm:$0xff]  ;;  %v2965_v5 = vld [vmem:[%s5210_s5 + $0x158] sm:$0xff] }
 0x1a4   :  { %v4180_v14 = vunpack.i.h.bf16 %v4178_v11  ;;  %v4179_v15 = vunpack.i.l.bf16 %v4178_v11  ;;  %v4175_v13 = vunpack.i.h.bf16 %v4173_v12  ;;  %v4174_v16 = vunpack.i.l.bf16 %v4173_v12  ;;  %v2941_v11 = vld [vmem:[%s5210_s5 + $0x98] sm:$0xff]  ;;  %v2972_v12 = vld [vmem:[%s5210_s5 + $0x190] sm:$0xff]  ;;  %v2950_v6 = vld [vmem:[%s5210_s5 + $0xe0] sm:$0xff] }
 0x1a6   :  { %v2369_v18 = vsel %vm2367_vm3, %v4174_v16, %v4175_v13  ;;  %v2371_v17 = vsel %vm2367_vm3, %v4179_v15, %v4180_v14 }
 0x1a7   :  { %v4188_v20 = vpop.permute.xlu1 %4187  ;;  %v4183_v22 = vpop.permute.xlu0 %4182  ;;  %v3880_v23 = vpack.c.bf16 %v2371_v17, %v2369_v18  ;;  %v2925_v18 = vld [vmem:[%s5210_s5 + $0x18] sm:$0xff]  ;;  %v2956_v17 = vld [vmem:[%s5210_s5 + $0x110] sm:$0xff] }
 0x1a8   :  { %v4185_v24 = vunpack.i.h.bf16 %v4183_v22  ;;  %v4184_v35 = vunpack.i.l.bf16 %v4183_v22  ;;  %v4190_v30 = vunpack.i.h.bf16 %v4188_v20  ;;  %v4189_v25 = vunpack.i.l.bf16 %v4188_v20  ;;  %v2957_v22 = vld [vmem:[%s5210_s5 + $0x118] sm:$0xff] }
 0x1a9   :  { %3530 = vmatmul.mubr.msk.f32.vlgmr.msra.gmra.mrb[36].mxu1 %vm1565_vm1, %v4675_v21  ;;  %3881 = vmatprep.subr.bf16.mxu0 %v3880_v23  ;;  %v2942_v23 = vld [vmem:[%s5210_s5 + $0xa0] sm:$0xff]  ;;  %v3942_v27 = vpack.c.bf16 %v2957_v22, %v2956_v17  ;;  %v2952_v22 = vld [vmem:[%s5210_s5 + $0xf0] sm:$0xff] }
 0x1aa   :  { %v2370_v31 = vsel %vm2367_vm3, %v4185_v24, %v4179_v15  ;;  %v2368_v33 = vsel %vm2367_vm3, %v4184_v35, %v4174_v16  ;;  %3867 = vmatpush1.bf16.msra.mxu1 %v4663_v45  ;;  %2103 = vmatprep.mubr.f32.mxu1 %v4235_v8  ;;  %v2459_v40 = vsel %vm2367_vm3, %v4175_v13, %v4189_v25  ;;  %v2924_v16 = vld [vmem:[%s5210_s5 + $0x10] sm:$0xff]  ;;  %v2943_v24 = vld [vmem:[%s5210_s5 + $0xa8] sm:$0xff] }
 0x1ab   :  { %v3882_v34 = vpack.c.bf16 %v2370_v31, %v2368_v33  ;;  %3869 = vmatprep.subr.bf16.mxu1 %v3868_v29  ;;  %v4193_v36 = vpop.permute.xlu0 %4192  ;;  %v2460_v43 = vsel %vm2367_vm3, %v4189_v25, %v4190_v30  ;;  %v4198_v52 = vpop.permute.xlu1 %4197  ;;  %v3908_v15 = vpack.c.bf16 %v2941_v11, %v2940_v7  ;;  %v3910_v20 = vpack.c.bf16 %v2925_v18, %v2924_v16  ;;  %v2926_v30 = vld [vmem:[%s5210_s5 + $0x20] sm:$0xff]  ;;  %v2927_v31 = vld [vmem:[%s5210_s5 + $0x28] sm:$0xff] }
 0x1ac   :  { %v4195_v32 = vunpack.i.h.bf16 %v4193_v36  ;;  %v4194_v37 = vunpack.i.l.bf16 %v4193_v36  ;;  %v4200_v55 = vunpack.i.h.bf16 %v4198_v52  ;;  %v4199_v56 = vunpack.i.l.bf16 %v4198_v52  ;;  %v2958_v33 = vld [vmem:[%s5210_s5 + $0x120] sm:$0xff]  ;;  %v2935_v16 = vld [vmem:[%s5210_s5 + $0x68] sm:$0xff] }
 0x1ad   :  { %3883 = vmatpush1.bf16.msra.mxu0 %v3882_v34  ;;  %v3912_v26 = vpack.c.bf16 %v2943_v24, %v2942_v23  ;;  %v2959_v34 = vld [vmem:[%s5210_s5 + $0x128] sm:$0xff]  ;;  %v3914_v36 = vpack.c.bf16 %v2927_v31, %v2926_v30  ;;  %v2982_v11 = vld [vmem:[%s5210_s5 + $0x1e0] sm:$0xff]  ;;  %v2953_v23 = vld [vmem:[%s5210_s5 + $0xf8] sm:$0xff] }
 0x1ae   :  { %v2461_v42 = vsel %vm2367_vm3, %v4180_v14, %v4194_v37  ;;  %v2462_v10 = vsel %vm2367_vm3, %v4194_v37, %v4195_v32  ;;  %v2771_v59 = vsel %vm2769_vm4, %v4199_v56, %v4200_v55  ;;  %v2973_v14 = vld [vmem:[%s5210_s5 + $0x198] sm:$0xff]  ;;  %v2944_v32 = vld [vmem:[%s5210_s5 + $0xb0] sm:$0xff]  ;;  %v3946_v38 = vpack.c.bf16 %v2959_v34, %v2958_v33  ;;  %v2978_v55 = vld [vmem:[%s5210_s5 + $0x1c0] sm:$0xff] }
 0x1af   :  { %v3886_v44 = vpack.c.bf16 %v2461_v42, %v2459_v40  ;;  %v3884_v48 = vpack.c.bf16 %v2462_v10, %v2460_v43  ;;  %v4203_v46 = vpop.permute.xlu0 %4202  ;;  %v4208_v57 = vpop.permute.xlu1 %4207  ;;  %v3940_v13 = vpack.c.bf16 %v2973_v14, %v2972_v12  ;;  %v2945_v37 = vld [vmem:[%s5210_s5 + $0xb8] sm:$0xff]  ;;  %v2928_v10 = vld [vmem:[%s5210_s5 + $0x30] sm:$0xff]  ;;  %v2983_v12 = vld [vmem:[%s5210_s5 + $0x1e8] sm:$0xff] }
 0x1b0   :  { %3535 = vmatmul.mubr.msk.f32.vlgmr.msra.gmra.mrb[30].mxu0 %vm1565_vm1, %v4686_v47  ;;  %v4205_v53 = vunpack.i.h.bf16 %v4203_v46  ;;  %v4204_v54 = vunpack.i.l.bf16 %v4203_v46  ;;  %v4210_v60 = vunpack.i.h.bf16 %v4208_v57  ;;  %v4209_v61 = vunpack.i.l.bf16 %v4208_v57  ;;  %v2977_v42 = vld [vmem:[%s5210_s5 + $0x1b8] sm:$0xff]  ;;  %v2979_v57 = vld [vmem:[%s5210_s5 + $0x1c8] sm:$0xff]  ;;  %v2966_v18 = vld [vmem:[%s5210_s5 + $0x160] sm:$0xff] }
 0x1b1   :  { %3531 = vmatmul.mubr.msk.f32.vlgmr.msra.gmra.mrb[36].mxu1 %vm1565_vm1, %v4686_v47  ;;  %3885 = vmatprep.subr.bf16.mxu0 %v3884_v48  ;;  %v3916_v40 = vpack.c.bf16 %v2945_v37, %v2944_v32  ;;  %v3948_v43 = vpack.c.bf16 %v2977_v42, %v2976_v39  ;;  %v2961_v46 = vld [vmem:[%s5210_s5 + $0x138] sm:$0xff]  ;;  %v2968_v31 = vld [vmem:[%s5210_s5 + $0x170] sm:$0xff]  ;;  %v3002_v32 = vld [vmem:[%s5210_s5 + $0x280] sm:$0xff] }
 0x1b2   :  { %3871 = vmatpush1.bf16.msra.mxu1 %v3870_v50  ;;  %3887 = vmatpush1.bf16.msra.mxu0 %v3886_v44  ;;  %v2773_v58 = vsel %vm2769_vm4, %v4204_v54, %v4205_v53  ;;  %v2946_v53 = vld [vmem:[%s5210_s5 + $0xc0] sm:$0xff]  ;;  %v2969_v33 = vld [vmem:[%s5210_s5 + $0x178] sm:$0xff]  ;;  %v3003_v37 = vld [vmem:[%s5210_s5 + $0x288] sm:$0xff] }
 0x1b3   :  { %3889 = vmatprep.subr.bf16.mxu1 %v3868_v29  ;;  %2202 = vmatprep.mubr.f32.mxu1 %v4235_v8  ;;  %v2975_v29 = vld [vmem:[%s5210_s5 + $0x1a8] sm:$0xff]  ;;  %v3034_v39 = vld [vmem:[%s5210_s5 + $0x380] sm:$0xff] }
 0x1b4   :  { %2531 = vmatprep.mubr.f32.mxu0 %v4235_v8  ;;  %v3944_v25 = vpack.c.bf16 %v2975_v29, %v2974_v28  ;;  %v2985_v28 = vld [vmem:[%s5210_s5 + $0x1f8] sm:$0xff]  ;;  %v2936_v29 = vld [vmem:[%s5210_s5 + $0x70] sm:$0xff] }
 0x1b8   :  { %3536 = vmatmul.mubr.msk.f32.vlgmr.msra.gmra.mrb[30].mxu0 %vm1565_vm1, %v4700_v51 }
 0x1b9   :  { %3532 = vmatmul.mubr.msk.f32.vlgmr.msra.gmra.mrb[36].mxu1 %vm1565_vm1, %v4700_v51 }
 0x1ba   :  { %3891 = vmatpush1.bf16.msra.mxu1 %v3870_v50  ;;  %2606 = vmatprep.mubr.f32.mxu1 %v4235_v8 }
 0x1bb   :  { %3893 = vmatprep.subr.bf16.mxu1 %v4667_v49  ;;  %v3900_v49 = vpack.c.bf16 %v2773_v58, %v2771_v59  ;;  %v2930_v58 = vld [vmem:[%s5210_s5 + $0x40] sm:$0xff]  ;;  %v2931_v59 = vld [vmem:[%s5210_s5 + $0x48] sm:$0xff] }
 0x1bd   :  { %3537 = vmatmul.mubr.msk.f32.vlgmr.msra.gmra.mrb[38].mxu1 %vm1565_vm1, %v4657_v41  ;;  %v2770_v41 = vsel %vm2769_vm4, %v4209_v61, %v4199_v56  ;;  %v3922_v61 = vpack.c.bf16 %v2931_v59, %v2930_v58 }
 0x1be   :  { %3895 = vmatpush1.bf16.msra.mxu1 %v4663_v45  ;;  %2677 = vmatprep.mubr.f32.mxu1 %v4235_v8  ;;  %v2772_v45 = vsel %vm2769_vm4, %v4210_v60, %v4204_v54  ;;  %v2947_v54 = vld [vmem:[%s5210_s5 + $0xc8] sm:$0xff]  ;;  %v3952_v60 = vpack.c.bf16 %v2979_v57, %v2978_v55 }
 0x1bf   :  { %3897 = vmatprep.subr.bf16.mxu1 %v3884_v48  ;;  %v3902_v62 = vpack.c.bf16 %v2772_v45, %v2770_v41  ;;  %v2960_v48 = vld [vmem:[%s5210_s5 + $0x130] sm:$0xff]  ;;  %v3920_v56 = vpack.c.bf16 %v2947_v54, %v2946_v53  ;;  %v2963_v41 = vld [vmem:[%s5210_s5 + $0x148] sm:$0xff] }
 0x1c0   :  { %v3950_v52 = vpack.c.bf16 %v2961_v46, %v2960_v48  ;;  %v2856_v57 = vpop.permute.xlu0 %2855 }
 0x1c5   :  { %3538 = vmatmul.mubr.msk.f32.vlgmr.msra.gmra.mrb[38].mxu1 %vm1565_vm1, %v4675_v21  ;;  %v2938_v21 = vld [vmem:[%s5210_s5 + $0x80] sm:$0xff] }
 0x1c6   :  { %3899 = vmatpush1.bf16.msra.mxu1 %v3886_v44  ;;  %2748 = vmatprep.mubr.f32.mxu1 %v4235_v8  ;;  %v3904_v1 = vpack.c.bf16 %v2939_v63, %v2938_v21  ;;  %v2929_v44 = vld [vmem:[%s5210_s5 + $0x38] sm:$0xff]  ;;  %v2980_v63 = vld [vmem:[%s5210_s5 + $0x1d0] sm:$0xff] }
 0x1c7   :  { %3901 = vmatprep.subr.bf16.mxu1 %v3900_v49  ;;  %v3918_v50 = vpack.c.bf16 %v2929_v44, %v2928_v10  ;;  %v2962_v49 = vld [vmem:[%s5210_s5 + $0x140] sm:$0xff]  ;;  %v2949_v21 = vld [vmem:[%s5210_s5 + $0xd8] sm:$0xff] }
 0x1c8   :  { %3905 = vmatprep.subr.bf16.mxu0 %v3904_v1  ;;  %v3954_v45 = vpack.c.bf16 %v2963_v41, %v2962_v49  ;;  %v2981_v1 = vld [vmem:[%s5210_s5 + $0x1d8] sm:$0xff]  ;;  %v3018_v41 = vld [vmem:[%s5210_s5 + $0x300] sm:$0xff] }
 0x1cd   :  { %3539 = vmatmul.mubr.msk.f32.vlgmr.msra.gmra.mrb[38].mxu1 %vm1565_vm1, %v4686_v47  ;;  %v2971_v47 = vld [vmem:[%s5210_s5 + $0x188] sm:$0xff] }
 0x1ce   :  { %3903 = vmatpush1.bf16.msra.mxu1 %v3902_v62  ;;  %2842 = vmatprep.mubr.f32.mxu1 %v4235_v8  ;;  %v3936_v3 = vpack.c.bf16 %v2971_v47, %v2970_v0  ;;  %v2948_v62 = vld [vmem:[%s5210_s5 + $0xd0] sm:$0xff] }
 0x1cf   :  { %v3924_v0 = vpack.c.bf16 %v2949_v21, %v2948_v62  ;;  %v2932_v47 = vld [vmem:[%s5210_s5 + $0x50] sm:$0xff]  ;;  %v3005_v21 = vld [vmem:[%s5210_s5 + $0x298] sm:$0xff] }
 0x1d0   :  { %3937 = vmatprep.subr.bf16.mxu1 %v3936_v3  ;;  %v3004_v62 = vld [vmem:[%s5210_s5 + $0x290] sm:$0xff] }
 0x1d5   :  { %3540 = vmatmul.mubr.msk.f32.vlgmr.msra.gmra.mrb[38].mxu1 %vm1565_vm1, %v4700_v51  ;;  %v2922_v51 = vld [vmem:[%s5210_s5] sm:$0xff] }
 0x1d6   :  { %v3906_v4 = vpack.c.bf16 %v2923_v2, %v2922_v51  ;;  %3939 = vmatpush3.bf16.msra.mxu1 %v3938_v9  ;;  %v2933_v51 = vld [vmem:[%s5210_s5 + $0x58] sm:$0xff]  ;;  %v3956_v2 = vpack.c.bf16 %v2981_v1, %v2980_v63  ;;  %v2951_v9 = vld [vmem:[%s5210_s5 + $0xe8] sm:$0xff] }
 0x1d7   :  { %3941 = vmatprep.subr.bf16.mxu1 %v3940_v13  ;;  %v3926_v3 = vpack.c.bf16 %v2933_v51, %v2932_v47  ;;  %v3928_v14 = vpack.c.bf16 %v2951_v9, %v2950_v6  ;;  %v2934_v13 = vld [vmem:[%s5210_s5 + $0x60] sm:$0xff]  ;;  %v3036_v51 = vld [vmem:[%s5210_s5 + $0x390] sm:$0xff]  ;;  %v2989_v9 = vld [vmem:[%s5210_s5 + $0x218] sm:$0xff] }
 0x1d8   :  { %3907 = vmatpush3.bf16.msra.mxu0 %v3906_v4  ;;  %v2964_v4 = vld [vmem:[%s5210_s5 + $0x150] sm:$0xff]  ;;  %v3930_v17 = vpack.c.bf16 %v2935_v16, %v2934_v13 }
 0x1d9   :  { %3909 = vmatprep.subr.bf16.mxu0 %v3908_v15  ;;  %v3958_v7 = vpack.c.bf16 %v2965_v5, %v2964_v4  ;;  %v3960_v15 = vpack.c.bf16 %v2983_v12, %v2982_v11 }
 0x1da   :  { %3943 = vmatpush3.bf16.msra.mxu1 %v3942_v27  ;;  %v3932_v27 = vpack.c.bf16 %v2953_v23, %v2952_v22  ;;  %v3020_v23 = vld [vmem:[%s5210_s5 + $0x310] sm:$0xff] }
 0x1db   :  { %3945 = vmatprep.subr.bf16.mxu1 %v3944_v25  ;;  %v2937_v25 = vld [vmem:[%s5210_s5 + $0x78] sm:$0xff] }
 0x1dc   :  { %3911 = vmatpush3.bf16.msra.mxu0 %v3910_v20  ;;  %v2967_v20 = vld [vmem:[%s5210_s5 + $0x168] sm:$0xff]  ;;  %v3934_v34 = vpack.c.bf16 %v2937_v25, %v2936_v29  ;;  %v3972_v29 = vpack.c.bf16 %v3005_v21, %v3004_v62 }
 0x1dd   :  { %3913 = vmatprep.subr.bf16.mxu0 %v3912_v26  ;;  %v3962_v24 = vpack.c.bf16 %v2967_v20, %v2966_v18  ;;  %v2984_v26 = vld [vmem:[%s5210_s5 + $0x1f0] sm:$0xff]  ;;  %v3007_v25 = vld [vmem:[%s5210_s5 + $0x2a8] sm:$0xff] }
 0x1de   :  { %3947 = vmatpush3.bf16.msra.mxu1 %v3946_v38  ;;  %v3964_v30 = vpack.c.bf16 %v2985_v28, %v2984_v26  ;;  %v3968_v38 = vpack.c.bf16 %v3003_v37, %v3002_v32  ;;  %v3039_v32 = vld [vmem:[%s5210_s5 + $0x3a8] sm:$0xff] }
 0x1df   :  { %3949 = vmatprep.subr.bf16.mxu1 %v3948_v43  ;;  %v3043_v62 = vld [vmem:[%s5210_s5 + $0x3c8] sm:$0xff] }
 0x1e0   :  { %3915 = vmatpush3.bf16.msra.mxu0 %v3914_v36  ;;  %v3966_v36 = vpack.c.bf16 %v2969_v33, %v2968_v31 }
 0x1e1   :  { %3917 = vmatprep.subr.bf16.mxu0 %v3916_v40  ;;  %v3035_v40 = vld [vmem:[%s5210_s5 + $0x388] sm:$0xff] }
 0x1e2   :  { %3951 = vmatpush3.bf16.msra.mxu1 %v3950_v52  ;;  %v4000_v42 = vpack.c.bf16 %v3035_v40, %v3034_v39 }
 0x1e3   :  { %3953 = vmatprep.subr.bf16.mxu1 %v3952_v60 }
 0x1e4   :  { %3919 = vmatpush3.bf16.msra.mxu0 %v3918_v50 }
 0x1e5   :  { %3921 = vmatprep.subr.bf16.mxu0 %v3920_v56 }
 0x1e6   :  { %3955 = vmatpush3.bf16.msra.mxu1 %v3954_v45  ;;  %v3019_v45 = vld [vmem:[%s5210_s5 + $0x308] sm:$0xff] }
 0x1e7   :  { %3957 = vmatprep.subr.bf16.mxu1 %v3956_v2  ;;  %v3037_v2 = vld [vmem:[%s5210_s5 + $0x398] sm:$0xff] }
 0x1e8   :  { %3923 = vmatpush3.bf16.msra.mxu0 %v3922_v61 }
 0x1e9   :  { %3925 = vmatprep.subr.bf16.mxu0 %v3924_v0 }
 0x1ea   :  { %3959 = vmatpush3.bf16.msra.mxu1 %v3958_v7  ;;  %v2988_v7 = vld [vmem:[%s5210_s5 + $0x210] sm:$0xff] }
 0x1eb   :  { %3961 = vmatprep.subr.bf16.mxu1 %v3960_v15  ;;  %v4002_v15 = vpack.c.bf16 %v3019_v45, %v3018_v41  ;;  %v3011_v41 = vld [vmem:[%s5210_s5 + $0x2c8] sm:$0xff]  ;;  %v3042_v45 = vld [vmem:[%s5210_s5 + $0x3c0] sm:$0xff] }
 0x1ec   :  { %3927 = vmatpush3.bf16.msra.mxu0 %v3926_v3 }
 0x1ed   :  { %3929 = vmatprep.subr.bf16.mxu0 %v3928_v14 }
 0x1ee   :  { %3963 = vmatpush3.bf16.msra.mxu1 %v3962_v24  ;;  %v3021_v24 = vld [vmem:[%s5210_s5 + $0x318] sm:$0xff] }
 0x1ef   :  { %3965 = vmatprep.subr.bf16.mxu1 %v3964_v30  ;;  %v3006_v30 = vld [vmem:[%s5210_s5 + $0x2a0] sm:$0xff] }
 0x1f0   :  { %3931 = vmatpush3.bf16.msra.mxu0 %v3930_v17 }
 0x1f1   :  { %3933 = vmatprep.subr.bf16.mxu0 %v3932_v27 }
 0x1f2   :  { %3967 = vmatpush3.bf16.msra.mxu1 %v3966_v36  ;;  %v3038_v36 = vld [vmem:[%s5210_s5 + $0x3a0] sm:$0xff] }
 0x1f3   :  { %4001 = vmatprep.subr.bf16.mxu1 %v4000_v42  ;;  %v4006_v42 = vpack.c.bf16 %v3021_v24, %v3020_v23  ;;  %v3047_v23 = vld [vmem:[%s5210_s5 + $0x3e8] sm:$0xff] }
 0x1f4   :  { %3935 = vmatpush3.bf16.msra.mxu0 %v3934_v34  ;;  %v4004_v34 = vpack.c.bf16 %v3037_v2, %v3036_v51  ;;  %v3026_v51 = vld [vmem:[%s5210_s5 + $0x340] sm:$0xff]  ;;  %v4016_v2 = vpack.c.bf16 %v3043_v62, %v3042_v45  ;;  %v3343_v62 = vld [vmem:[%s5212_s7 + $0x28] sm:$0xff] }
 0x1f5   :  { %3969 = vmatprep.subr.bf16.mxu0 %v3968_v38  ;;  %v3974_v38 = vpack.c.bf16 %v2989_v9, %v2988_v7  ;;  %v3045_v7 = vld [vmem:[%s5210_s5 + $0x3d8] sm:$0xff]  ;;  %v3342_v45 = vld [vmem:[%s5212_s7 + $0x20] sm:$0xff] }
 0x215   :  { %v4809_v19 = vpop.f32.mrb[28].mxu0 }
 0x216   :  { %v4820_v35 = vpop.f32.mrb[29].mxu0 }
 0x28b   :  { %v2533_v43 = vpop.f32.mrb[30].mxu0 }
 0x28c   :  { %v2204_v10 = vpop.f32.mrb[36].mxu1  ;;  %v2535_v44 = vpop.f32.mrb[31].mxu0 }
 0x28d   :  { %v2211_v48 = vmax.f32 %v4809_v19, %v2204_v10  ;;  %v2206_v50 = vpop.f32.mrb[37].mxu1  ;;  %v2986_v19 = vld [vmem:[%s5210_s5 + $0x200] sm:$0xff] }
 0x28e   :  { %v2212_v46 = vmax.f32 %v4820_v35, %v2206_v50  ;;  %v2987_v35 = vld [vmem:[%s5210_s5 + $0x208] sm:$0xff]  ;;  %v2990_v10 = vld [vmem:[%s5210_s5 + $0x220] sm:$0xff]  ;;  %v4008_v50 = vpack.c.bf16 %v3039_v32, %v3038_v36  ;;  %v3048_v36 = vld [vmem:[%s5210_s5 + $0x3f0] sm:$0xff] }
 0x28f   :  { %v2540_v52 = vmax.f32 %v2211_v48, %v2533_v43  ;;  %v3970_v14 = vpack.c.bf16 %v2987_v35, %v2986_v19  ;;  %v3976_v43 = vpack.c.bf16 %v3007_v25, %v3006_v30  ;;  %v3022_v48 = vld [vmem:[%s5210_s5 + $0x320] sm:$0xff]  ;;  %v3025_v19 = vld [vmem:[%s5210_s5 + $0x338] sm:$0xff] }
 0x290   :  { %v2541_v53 = vmax.f32 %v2212_v46, %v2535_v44  ;;  %v2991_v44 = vld [vmem:[%s5210_s5 + $0x228] sm:$0xff]  ;;  %v3010_v35 = vld [vmem:[%s5210_s5 + $0x2c0] sm:$0xff]  ;;  %v3049_v32 = vld [vmem:[%s5210_s5 + $0x3f8] sm:$0xff] }
 0x291   :  { %v3023_v46 = vld [vmem:[%s5210_s5 + $0x328] sm:$0xff]  ;;  %v3030_v30 = vld [vmem:[%s5210_s5 + $0x360] sm:$0xff] }
 0x2a8   :  { %v2844_v54 = vpop.f32.mrb[38].mxu1 }
 0x2a9   :  { %v2851_v55 = vmax.f32 %v2540_v52, %v2844_v54  ;;  %v2846_v56 = vpop.f32.mrb[39].mxu1  ;;  %v3008_v52 = vld [vmem:[%s5210_s5 + $0x2b0] sm:$0xff] }
 0x2aa   :  { %v2852_v58 = vmax.f32 %v2541_v53, %v2846_v56  ;;  %v3009_v53 = vld [vmem:[%s5210_s5 + $0x2b8] sm:$0xff]  ;;  %v3040_v54 = vld [vmem:[%s5210_s5 + $0x3b0] sm:$0xff]  ;;  %v3978_v56 = vpack.c.bf16 %v2991_v44, %v2990_v10 }
 0x2ab   :  { %v2858_v59 = vadd.f32 %v2856_v57, %v2851_v55  ;;  %v3041_v55 = vld [vmem:[%s5210_s5 + $0x3b8] sm:$0xff]  ;;  %v3032_v10 = vld [vmem:[%s5210_s5 + $0x370] sm:$0xff] }
 0x2ac   :  { %v2859_v60 = vadd.f32 %v2856_v57, %v2852_v58  ;;  %v4010_v57 = vpack.c.bf16 %v3023_v46, %v3022_v48  ;;  %v3980_v58 = vpack.c.bf16 %v3009_v53, %v3008_v52  ;;  %v3033_v44 = vld [vmem:[%s5210_s5 + $0x378] sm:$0xff] }
 0x2ad   :  { %v2860_v61 = vmax.f32 %v2858_v59, 0.0  ;;  %v2992_v59 = vld [vmem:[%s5210_s5 + $0x230] sm:$0xff]  ;;  %v4030_v52 = vpack.c.bf16 %v3033_v44, %v3032_v10 }
 0x2ae   :  { %v2861_v49 = vmax.f32 %v2859_v60, 0.0  ;;  %v2993_v60 = vld [vmem:[%s5210_s5 + $0x238] sm:$0xff] }
 0x2af   :  { %2862 = vst [vmem:[#allocation2] sm:$0xff] %v2860_v61  ;;  %v3024_v61 = vld [vmem:[%s5210_s5 + $0x330] sm:$0xff]  ;;  %v3982_v21 = vpack.c.bf16 %v2993_v60, %v2992_v59  ;;  %v3338_v59 = vld [vmem:[%s5212_s7] sm:$0xff]  ;;  %v3339_v60 = vld [vmem:[%s5212_s7 + $0x8] sm:$0xff] }
 0x2b0   :  { %2864 = vst [vmem:[#allocation2 + $0x8] sm:$0xff] %v2861_v49  ;;  %v4012_v49 = vpack.c.bf16 %v3041_v55, %v3040_v54 }
 0x2b6   :  { %v2867_v63 = vld [vmem:[#allocation2 + $0x1] sm:$0x1]  ;;  %v2871_v4 = vld [vmem:[#allocation2 + $0x3] sm:$0x1]  ;;  %v2865_v11 = vld [vmem:[#allocation2] sm:$0x1] }
 0x2b7   :  { %v2868_v0 = vld [vmem:[#allocation2 + $0x9] sm:$0x1]  ;;  %v2872_v1 = vld [vmem:[#allocation2 + $0xb] sm:$0x1]  ;;  %v2866_v47 = vld [vmem:[#allocation2 + $0x8] sm:$0x1] }
 0x2b8   :  { %v2889_v3 = vrot.slane %v2868_v0, 7  ;;  %v2899_v5 = vrot.slane %v2872_v1, 7  ;;  %v2883_v6 = vrot.slane %v2866_v47, 7  ;;  %v2870_v12 = vld [vmem:[#allocation2 + $0xa] sm:$0x1]  ;;  %v3984_v0 = vpack.c.bf16 %v3011_v41, %v3010_v35  ;;  %v2994_v1 = vld [vmem:[%s5210_s5 + $0x240] sm:$0xff] }
 0x2b9   :  { %v2876_v13 = vld [vmem:[#allocation2 + $0xd] sm:$0x1]  ;;  %v2894_v20 = vrot.slane %v2870_v12, 7  ;;  %v2880_v22 = vld [vmem:[#allocation2 + $0xf] sm:$0x1]  ;;  %v3341_v35 = vld [vmem:[%s5212_s7 + $0x18] sm:$0xff] }
 0x2ba   :  { %v2890_v16 = vsel %vm2884_vm5, %v2889_v3, %v2867_v63  ;;  %v2900_v18 = vsel %vm2884_vm5, %v2899_v5, %v2871_v4  ;;  %v2885_v17 = vsel %vm2884_vm5, %v2883_v6, %v2865_v11  ;;  %v2869_v27 = vld [vmem:[#allocation2 + $0x2] sm:$0x1]  ;;  %v2909_v26 = vrot.slane %v2876_v13, 7  ;;  %v2875_v33 = vld [vmem:[#allocation2 + $0x5] sm:$0x1]  ;;  %v2995_v47 = vld [vmem:[%s5210_s5 + $0x248] sm:$0xff] }
 0x2bb   :  { %3121 = vmatprep.mubr.f32.mxu0 %v2890_v16  ;;  %3191 = vmatprep.mubr.f32.mxu1 %v2900_v18  ;;  %v2919_v28 = vrot.slane %v2880_v22, 7  ;;  %v2895_v31 = vsel %vm2884_vm5, %v2894_v20, %v2869_v27  ;;  %v2879_v39 = vld [vmem:[#allocation2 + $0x7] sm:$0x1]  ;;  %v4014_v63 = vpack.c.bf16 %v3025_v19, %v3024_v61  ;;  %v3027_v3 = vld [vmem:[%s5210_s5 + $0x348] sm:$0xff]  ;;  %v3012_v4 = vld [vmem:[%s5210_s5 + $0x2d0] sm:$0xff]  ;;  %v3986_v9 = vpack.c.bf16 %v2995_v47, %v2994_v1 }
 0x2bc   :  { %3122 = vmatmul.mubr.f32.vlgmr.msra.gmra.mrb[32].mxu0 %v2885_v17  ;;  %3192 = vmatmul.mubr.f32.vlgmr.msra.gmra.mrb[40].mxu1 %v2895_v31  ;;  %v2910_v37 = vsel %vm2884_vm5, %v2909_v26, %v2875_v33  ;;  %v3013_v5 = vld [vmem:[%s5210_s5 + $0x2d8] sm:$0xff]  ;;  %v3044_v6 = vld [vmem:[%s5210_s5 + $0x3d0] sm:$0xff]  ;;  %v4018_v11 = vpack.c.bf16 %v3027_v3, %v3026_v51  ;;  %v3014_v17 = vld [vmem:[%s5210_s5 + $0x2e0] sm:$0xff]  ;;  %v4033_v19 = vpack.c.bf16 %v3339_v60, %v3338_v59 }
 0x2bd   :  { %3971 = vmatpush3.bf16.msra.mxu0 %v3970_v14  ;;  %4003 = vmatpush3.bf16.msra.mxu1 %v4002_v15  ;;  %v2920_v40 = vsel %vm2884_vm5, %v2919_v28, %v2879_v39  ;;  %v3988_v12 = vpack.c.bf16 %v3013_v5, %v3012_v4  ;;  %v2996_v14 = vld [vmem:[%s5210_s5 + $0x250] sm:$0xff]  ;;  %v2997_v15 = vld [vmem:[%s5210_s5 + $0x258] sm:$0xff]  ;;  %v4020_v16 = vpack.c.bf16 %v3045_v7, %v3044_v6  ;;  %v3015_v20 = vld [vmem:[%s5210_s5 + $0x2e8] sm:$0xff] }
 0x2be   :  { %3261 = vmatprep.mubr.f32.mxu0 %v2910_v37  ;;  %3331 = vmatprep.mubr.f32.mxu1 %v2920_v40  ;;  %v3028_v13 = vld [vmem:[%s5210_s5 + $0x350] sm:$0xff]  ;;  %v3029_v18 = vld [vmem:[%s5210_s5 + $0x358] sm:$0xff]  ;;  %v3046_v22 = vld [vmem:[%s5210_s5 + $0x3e0] sm:$0xff]  ;;  %v3990_v24 = vpack.c.bf16 %v2997_v15, %v2996_v14  ;;  %v3992_v26 = vpack.c.bf16 %v3015_v20, %v3014_v17 }
 0x2bf   :  { %3973 = vmatprep.subr.bf16.mxu0 %v3972_v29  ;;  %4005 = vmatprep.subr.bf16.mxu1 %v4004_v34  ;;  %v4022_v27 = vpack.c.bf16 %v3029_v18, %v3028_v13  ;;  %v2998_v28 = vld [vmem:[%s5210_s5 + $0x260] sm:$0xff]  ;;  %v2999_v29 = vld [vmem:[%s5210_s5 + $0x268] sm:$0xff]  ;;  %v4024_v25 = vpack.c.bf16 %v3047_v23, %v3046_v22  ;;  %v3016_v33 = vld [vmem:[%s5210_s5 + $0x2f0] sm:$0xff] }
 0x2c0   :  { %v3031_v31 = vld [vmem:[%s5210_s5 + $0x368] sm:$0xff]  ;;  %v3017_v34 = vld [vmem:[%s5210_s5 + $0x2f8] sm:$0xff]  ;;  %v3994_v37 = vpack.c.bf16 %v2999_v29, %v2998_v28  ;;  %v3000_v40 = vld [vmem:[%s5210_s5 + $0x270] sm:$0xff] }
 0x2c1   :  { %3975 = vmatpush3.bf16.msra.mxu0 %v3974_v38  ;;  %4007 = vmatpush3.bf16.msra.mxu1 %v4006_v42  ;;  %v4026_v39 = vpack.c.bf16 %v3031_v31, %v3030_v30  ;;  %v3996_v38 = vpack.c.bf16 %v3017_v34, %v3016_v33  ;;  %v3001_v42 = vld [vmem:[%s5210_s5 + $0x278] sm:$0xff]  ;;  %v2874_v48 = vld [vmem:[#allocation2 + $0xc] sm:$0x1]  ;;  %v2878_v46 = vld [vmem:[#allocation2 + $0xe] sm:$0x1] }
 0x2c2   :  { %3977 = vmatprep.subr.bf16.mxu0 %v3976_v43  ;;  %4009 = vmatprep.subr.bf16.mxu1 %v4008_v50  ;;  %v4028_v43 = vpack.c.bf16 %v3049_v32, %v3048_v36  ;;  %v3998_v50 = vpack.c.bf16 %v3001_v42, %v3000_v40  ;;  %v2904_v53 = vrot.slane %v2874_v48, 7  ;;  %v2914_v54 = vrot.slane %v2878_v46, 7  ;;  %v2873_v55 = vld [vmem:[#allocation2 + $0x4] sm:$0x1]  ;;  %v3340_v61 = vld [vmem:[%s5212_s7 + $0x10] sm:$0xff] }
 0x2c3   :  { %v4036_v41 = vpack.c.bf16 %v3341_v35, %v3340_v61  ;;  %v3542_v20 = vld [vmem:[%s5213_s8] ss:$0 sm:$0xff] }
 0x2c5   :  { %3979 = vmatpush3.bf16.msra.mxu0 %v3978_v56  ;;  %4011 = vmatpush3.bf16.msra.mxu1 %v4010_v57  ;;  %v2905_v56 = vsel %vm2884_vm5, %v2904_v53, %v2873_v55  ;;  %v2877_v57 = vld [vmem:[#allocation2 + $0x6] sm:$0x1] }
 0x2c6   :  { %3981 = vmatprep.subr.bf16.mxu0 %v3980_v58  ;;  %4013 = vmatprep.subr.bf16.mxu1 %v4012_v49  ;;  %v2915_v58 = vsel %vm2884_vm5, %v2914_v54, %v2877_v57  ;;  %v4240_v49 = vmov 0.0|0.0  }
 0x2c9   :  { %3983 = vmatpush3.bf16.msra.mxu0 %v3982_v21  ;;  %4015 = vmatpush3.bf16.msra.mxu1 %v4014_v63  ;;  %v4039_v21 = vpack.c.bf16 %v3343_v62, %v3342_v45  ;;  %v3344_v63 = vld [vmem:[%s5212_s7 + $0x30] sm:$0xff] }
 0x2ca   :  { %3985 = vmatprep.subr.bf16.mxu0 %v3984_v0  ;;  %4017 = vmatprep.subr.bf16.mxu1 %v4016_v2  ;;  %v3345_v0 = vld [vmem:[%s5212_s7 + $0x38] sm:$0xff]  ;;  %v3541_v2 = vld [vmem:[%s5211_s6] ss:$0 sm:$0xff]  ;;  %s4242_s6 = smov [#allocation3]  }
 0x2cb   :  { %v4042_v1 = vpack.c.bf16 %v3345_v0, %v3344_v63  ;;  %s3434_s2 = sshll.u32 %s4242_s6, 4  ;;  %s3435_s2 = int_to_ptr.vmem [resolvable:$true] %s3434_s2 }
 0x2cc   :  { %s4211_s14 = scalar_lea.vmem %s3435_s2, 32  ;;  %p4216_p1 = scmp.lt.s32.totalorder %s3435_s2, %s3435_s2 }
 0x2cd   :  { %3987 = vmatpush3.bf16.msra.mxu0 %v3986_v9  ;;  %4019 = vmatpush3.bf16.msra.mxu1 %v4018_v11  ;;  %p4212_p0 = scmp.ne.s32.totalorder %s3435_s2, %s4211_s14  ;;  %p4217_p2 = scmp.lt.s32.totalorder %s4211_s14, %s4211_s14 }
 0x2ce   :  { %3989 = vmatprep.subr.bf16.mxu0 %v3988_v12  ;;  %4021 = vmatprep.subr.bf16.mxu1 %v4020_v16 }
 0x2cf   :  { %p4218_p3 = por %p4217_p2, %p4216_p1 }
 0x2d1   :  { %3991 = vmatpush3.bf16.msra.mxu0 %v3990_v24  ;;  %4023 = vmatpush3.bf16.msra.mxu1 %v4022_v27  ;;  %p4219_p4 = pnand %p4218_p3, %p4212_p0 }
 0x2d2   :  { %3993 = vmatprep.subr.bf16.mxu0 %v3992_v26  ;;  %4025 = vmatprep.subr.bf16.mxu1 %v4024_v25 }
 0x2d5   :  { %3995 = vmatpush3.bf16.msra.mxu0 %v3994_v37  ;;  %4027 = vmatpush3.bf16.msra.mxu1 %v4026_v39 }
 0x2d6   :  { %3997 = vmatprep.subr.bf16.mxu0 %v3996_v38  ;;  %4029 = vmatprep.subr.bf16.mxu1 %v4028_v43 }
 0x2d9   :  { %3999 = vmatpush3.bf16.msra.mxu0 %v3998_v50  ;;  %4031 = vmatpush3.bf16.msra.mxu1 %v4030_v52 }
 0x2da   :  { %4032 = vmatprep.subr.bf16.mxu0 %v4240_v49 }
 0x2dc   :  { %3262 = vmatmul.mubr.f32.vlgmr.msra.gmra.mrb[34].mxu0 %v2905_v56  ;;  %3332 = vmatmul.mubr.f32.vlgmr.msra.gmra.mrb[42].mxu1 %v2915_v58 }
 0x2dd   :  { %4034 = vmatpush3.bf16.msra.mxu0 %v4033_v19  ;;  %3709 = vmatprep.mubr.msk.f32.mxu0 %vm4241_vm6, %v4235_v8 }
 0x2de   :  { %4035 = vmatprep.subr.bf16.mxu0 %v4240_v49 }
 0x2e1   :  { %4037 = vmatpush3.bf16.msra.mxu0 %v4036_v41 }
 0x2e2   :  { %4038 = vmatprep.subr.bf16.mxu0 %v4240_v49 }
 0x2e5   :  { %4040 = vmatpush3.bf16.msra.mxu0 %v4039_v21 }
 0x2e6   :  { %4041 = vmatprep.subr.bf16.mxu0 %v4240_v49 }
 0x2e9   :  { %4043 = vmatpush3.bf16.msra.mxu0 %v4042_v1 }
 0x38f   :  { %v3576_v47 = vpop.f32.mrb[32].mxu0  ;;  %v3611_v51 = vpop.f32.mrb[40].mxu1 }
 0x390   :  { %v3577_v3 = vpop.f32.mrb[33].mxu0  ;;  %v3612_v5 = vpop.f32.mrb[41].mxu1 }
 0x391   :  { %v3578_v4 = vadd.f32 %v3577_v3, %v3576_v47  ;;  %v3613_v6 = vadd.f32 %v3612_v5, %v3611_v51 }
 0x393   :  { %v3124_v7 = vadd.f32 %v3578_v4, %v3541_v2 }
 0x395   :  { %v3194_v9 = vadd.f32 %v3613_v6, %v3124_v7 }
 0x3af   :  { %v3646_v11 = vpop.f32.mrb[34].mxu0  ;;  %v3681_v12 = vpop.f32.mrb[42].mxu1 }
 0x3b0   :  { %v3647_v14 = vpop.f32.mrb[35].mxu0  ;;  %v3682_v13 = vpop.f32.mrb[43].mxu1 }
 0x3b1   :  { %v3648_v15 = vadd.f32 %v3647_v14, %v3646_v11  ;;  %v3683_v16 = vadd.f32 %v3682_v13, %v3681_v12 }
 0x3b3   :  { %v3264_v8 = vadd.f32 %v3648_v15, %v3194_v9 }
 0x3b5   :  { %v3334_v18 = vadd.f32 %v3683_v16, %v3264_v8 }
 0x3b7   :  { %v3337_v17 = vmax.f32 %v3334_v18, 0.0 }
 0x3b9   :  { %3710 = vmatmul.mubr.msk.f32.vlgmr.msra.gmra.mrb[36].mxu0 %vm3353_vm7, %v3337_v17 }
 0x48c   :  { %v3423_v22 = vpop.f32.mrb[36].mxu0 }
 0x48d   :  { %v3424_v23 = vadd.f32 %v3542_v20, %v3423_v22  ;;  %v3711_v24 = vpop.f32.mrb[37].mxu0 }
 0x48f   :  { %3427 = vst [vmem:[#allocation3] sm:$0x3] %v3424_v23 }
 0x490   :  { %4222 = shalt.err (!%p4219_p4)
}
 0x491   :  { %s4223_s17 = scalar_lea.hbm %s5214_s9, 32 }
 0x492   :  { %p4224_p5 = scmp.ne.s32.totalorder %s5214_s9, %s4223_s17  ;;  %p4227_p6 = scmp.lt.u32.totalorder %s4223_s17, %s5214_s9 }
 0x494   :  { %p4229_p7 = pnand %p4227_p6, %p4224_p5 }
 0x496   :  { %4232 = shalt.err (!%p4229_p7)
}
 0x497   :  { %3437 = dma.vmem_to_hbm [thread:$0]  %s3435_s2, 32, %s5214_s9, [#allocation4]  }
 0x498   :  { %4233 = dma.done.wait [#allocation4], 32  }
 0x499   :  { %4234 = vsyncadd [#allocation4], 4294967264 }
 0x49a   :  { %3441 = vsyncpa [#allocation4], 1 }

</bundles_post_ra>
